<compile_context>
chip_gen: v5e
topology: v5e:2x2
jax: 0.10.0
libtpu: 0.0.40
codegen_flags: <defaults>
</compile_context>

<pallas_src>
import jax
import jax.numpy as jnp
from jax.experimental import pallas as pl
from jax.experimental.pallas import tpu as pltpu


def dwt_kernel(x_ref, o_ref):
    # x_ref block: (1, C, Hb, W)          -- one batch item, all channels, Hb rows.
    # o_ref block: (4, 1, C, Hb//2, W//2) -- the 4 sub-bands for the same slab.
    x = x_ref[0]                           # (C, Hb, W), input dtype (no f32 upcast)
    C, Hb, W = x.shape

    # Split rows/cols into (even, odd) pairs; exact inverse of the PyTorch strided
    # slicing. Row split is a cheap sublane move; column split is the lane shuffle.
    xr = x.reshape(C, Hb // 2, 2, W // 2, 2)
    x1 = xr[:, :, 0, :, 0]    # even rows, even cols
    x2 = xr[:, :, 1, :, 0]    # odd rows,  even cols
    x3 = xr[:, :, 0, :, 1]    # even rows, odd cols
    x4 = xr[:, :, 1, :, 1]    # odd rows,  odd cols

    # Butterfly: 8 adds + 4 muls per 4 outputs (vs 12 adds + full-block scale before).
    a = (x1 + x2) * 0.5
    b = (x3 + x4) * 0.5
    c = (x2 - x1) * 0.5
    d = (x4 - x3) * 0.5

    o_ref[0, 0] = (a + b).astype(o_ref.dtype)     # LL =  x1 + x2 + x3 + x4
    o_ref[1, 0] = (b - a).astype(o_ref.dtype)     # HL = -x1 - x2 + x3 + x4
    o_ref[2, 0] = (c + d).astype(o_ref.dtype)     # LH = -x1 + x2 - x3 + x4
    o_ref[3, 0] = (d - c).astype(o_ref.dtype)     # HH =  x1 - x2 - x3 + x4


def _pick_row_block(B, C, H, W, itemsize, *, target_block_bytes=2 << 20,
                    min_grid_steps=4):
    """Pick a row block Hb that (a) divides H, (b) keeps both the input block
    (second-minor Hb) and output block (second-minor Hb//2) sublane-tile aligned
    for the dtype, (c) targets a ~2 MiB input slab, and (d) leaves at least
    `min_grid_steps` grid iterations when possible (pipelining / megacore)."""
    # Packed sublane tile per dtype width: f32 -> 8, bf16 -> 16, int8/fp8 -> 32.
    sublane = {4: 8, 2: 16, 1: 32}.get(itemsize, 8)
    gran = 2 * sublane  # Hb multiple of gran => Hb and Hb//2 both tile-aligned.

    bytes_per_row = max(1, C * W * itemsize)
    target = target_block_bytes // bytes_per_row
    # Cap rows so B * n_h >= min_grid_steps when the batch alone doesn't cover it.
    if B < min_grid_steps:
        target = min(target, max(1, (H * B) // min_grid_steps))
    target = max(gran, min(target, H))

    # Largest multiple of gran <= target that divides H.
    hb = (target // gran) * gran
    while hb >= gran:
        if H % hb == 0:
            return hb
        hb -= gran
    # None below target: smallest multiple of gran above target that divides H.
    hb = ((target + gran - 1) // gran) * gran
    while hb < H:
        if H % hb == 0:
            return hb
        hb += gran
    # Awkward H (no multiple-of-gran divisor): fall back to the full image.
    # Block == full dim is always layout-legal; only costs VMEM for very large H.
    # TODO(synk): masked-tail (cdiv) grid for huge images with awkward row counts.
    return H


def dwt(x, *, target_block_bytes=2 << 20):
    """x: (B, C, H, W) -> (4*B, C, H/2, W/2), matching dwt_init semantics."""
    B, C, H, W = x.shape
    assert H % 2 == 0 and W % 2 == 0, "spatial dims must be even"
    Ho, Wo = H // 2, W // 2
    out_dtype = x.dtype
    in_itemsize = jnp.dtype(x.dtype).itemsize
    out_itemsize = jnp.dtype(out_dtype).itemsize

    Hb = _pick_row_block(B, C, H, W, in_itemsize,
                         target_block_bytes=target_block_bytes)
    n_h = H // Hb

    # Pure streaming kernel: 8 adds + 4 muls per 2x2 pixel group (3 ops / input elem).
    cost = pl.CostEstimate(
        flops=3 * B * C * H * W,
        transcendentals=0,
        bytes_accessed=B * C * H * W * (in_itemsize + out_itemsize),
    )

    # NOTE: output lane dim is W/2; it is lane-dense (>=128) for realistic SR image
    # widths (W >= 256). Tiny test shapes take masked stores (correct, just slower).
    out = pl.pallas_call(
        dwt_kernel,
        out_shape=jax.ShapeDtypeStruct((4, B, C, Ho, Wo), out_dtype),
        grid=(B, n_h),
        in_specs=[
            pl.BlockSpec((1, C, Hb, W), lambda b, h: (b, 0, h, 0)),
        ],
        out_specs=pl.BlockSpec((4, 1, C, Hb // 2, Wo), lambda b, h: (0, b, 0, h, 0)),
        compiler_params=pltpu.CompilerParams(
            dimension_semantics=("parallel", "parallel"),
            # ~2 MiB blocks => double-buffered IO + deinterleave temps stay well
            # under 48 MiB; leaves headroom inside v7x's 64 MiB physical VMEM and
            # lifts the 16/32 MiB default scoped limits on v5e/v6e.
            vmem_limit_bytes=48 * 1024 * 1024,
        ),
        cost_estimate=cost,
    )(x)

    # (4, B, C, Ho, Wo) -> (4*B, C, Ho, Wo): free reshape, identical layout to
    # torch.cat((LL, HL, LH, HH), 0).
    return out.reshape(4 * B, C, Ho, Wo)


def dwt_ref(x):
    """Pure-JAX reference mirroring the PyTorch dwt_init."""
    x01 = x[:, :, 0::2, :] / 2
    x02 = x[:, :, 1::2, :] / 2
    x1 = x01[:, :, :, 0::2]
    x2 = x02[:, :, :, 0::2]
    x3 = x01[:, :, :, 1::2]
    x4 = x02[:, :, :, 1::2]
    x_LL = x1 + x2 + x3 + x4
    x_HL = -x1 - x2 + x3 + x4
    x_LH = -x1 + x2 - x3 + x4
    x_HH = x1 - x2 - x3 + x4
    return jnp.concatenate((x_LL, x_HL, x_LH, x_HH), axis=0)


if __name__ == "__main__":
    key = jax.random.PRNGKey(0)
    x = jax.random.normal(key, (2, 4, 16, 16), dtype=jnp.float32)

    out = dwt(x)
    out = jax.block_until_ready(out)

    ref = dwt_ref(x)
    assert out.shape == (8, 4, 8, 8), out.shape
    assert out.dtype == jnp.float32
    assert jnp.allclose(out, ref, atol=1e-5, rtol=1e-5), float(
        jnp.max(jnp.abs(out - ref)))

    print("KERNEL_OK")
</pallas_src>

<mosaic_0001>
module attributes {stable_mosaic.version = 11 : i64} {
  func.func @dwt_kernel(%arg0: i32, %arg1: i32, %arg2: memref<1x4x16x16xf32, #tpu.memory_space<vmem>>, %arg3: memref<4x1x4x8x8xf32, #tpu.memory_space<vmem>>) attributes {dimension_semantics = [#tpu.dimension_semantics<parallel>, #tpu.dimension_semantics<parallel>], iteration_bounds = array<i64: 2, 1>, scalar_prefetch = 0 : i64, scratch_operands = 0 : i64, tpu.core_type = #tpu.core_type<tc>, window_params = [{transform_indices = @transform_0, window_bounds = array<i64: 1, 4, 16, 16>}, {transform_indices = @transform_1, window_bounds = array<i64: 4, 1, 4, 8, 8>}]} {
    %c0 = arith.constant 0 : index
    %c0_0 = arith.constant 0 : index
    %c0_1 = arith.constant 0 : index
    %c0_2 = arith.constant 0 : index
    %0 = vector.load %arg2[%c0, %c0_0, %c0_1, %c0_2] : memref<1x4x16x16xf32, #tpu.memory_space<vmem>>, vector<1x4x16x16xf32>
    %1 = vector.shape_cast %0 : vector<1x4x16x16xf32> to vector<4x16x16xf32>
    %2 = vector.shape_cast %1 : vector<4x16x16xf32> to vector<4x8x2x8x2xf32>
    %3 = vector.extract_strided_slice %2 {offsets = [0, 0, 0, 0, 0], sizes = [4, 8, 1, 8, 1], strides = [1, 1, 1, 1, 1]} : vector<4x8x2x8x2xf32> to vector<4x8x1x8x1xf32>
    %4 = vector.shape_cast %3 : vector<4x8x1x8x1xf32> to vector<4x8x8xf32>
    %5 = vector.extract_strided_slice %2 {offsets = [0, 0, 1, 0, 0], sizes = [4, 8, 1, 8, 1], strides = [1, 1, 1, 1, 1]} : vector<4x8x2x8x2xf32> to vector<4x8x1x8x1xf32>
    %6 = vector.shape_cast %5 : vector<4x8x1x8x1xf32> to vector<4x8x8xf32>
    %7 = vector.extract_strided_slice %2 {offsets = [0, 0, 0, 0, 1], sizes = [4, 8, 1, 8, 1], strides = [1, 1, 1, 1, 1]} : vector<4x8x2x8x2xf32> to vector<4x8x1x8x1xf32>
    %8 = vector.shape_cast %7 : vector<4x8x1x8x1xf32> to vector<4x8x8xf32>
    %9 = vector.extract_strided_slice %2 {offsets = [0, 0, 1, 0, 1], sizes = [4, 8, 1, 8, 1], strides = [1, 1, 1, 1, 1]} : vector<4x8x2x8x2xf32> to vector<4x8x1x8x1xf32>
    %10 = vector.shape_cast %9 : vector<4x8x1x8x1xf32> to vector<4x8x8xf32>
    %11 = arith.addf %4, %6 : vector<4x8x8xf32>
    %cst = arith.constant 5.000000e-01 : f32
    %12 = vector.broadcast %cst : f32 to vector<4x8x8xf32>
    %13 = arith.mulf %11, %12 : vector<4x8x8xf32>
    %14 = arith.addf %8, %10 : vector<4x8x8xf32>
    %cst_3 = arith.constant 5.000000e-01 : f32
    %15 = vector.broadcast %cst_3 : f32 to vector<4x8x8xf32>
    %16 = arith.mulf %14, %15 : vector<4x8x8xf32>
    %17 = arith.subf %6, %4 : vector<4x8x8xf32>
    %cst_4 = arith.constant 5.000000e-01 : f32
    %18 = vector.broadcast %cst_4 : f32 to vector<4x8x8xf32>
    %19 = arith.mulf %17, %18 : vector<4x8x8xf32>
    %20 = arith.subf %10, %8 : vector<4x8x8xf32>
    %cst_5 = arith.constant 5.000000e-01 : f32
    %21 = vector.broadcast %cst_5 : f32 to vector<4x8x8xf32>
    %22 = arith.mulf %20, %21 : vector<4x8x8xf32>
    %23 = arith.addf %13, %16 : vector<4x8x8xf32>
    %c0_6 = arith.constant 0 : index
    %c0_7 = arith.constant 0 : index
    %c0_8 = arith.constant 0 : index
    %c0_9 = arith.constant 0 : index
    %c0_10 = arith.constant 0 : index
    %24 = vector.load %arg3[%c0_6, %c0_7, %c0_8, %c0_9, %c0_10] : memref<4x1x4x8x8xf32, #tpu.memory_space<vmem>>, vector<1x1x4x8x8xf32>
    %25 = vector.shape_cast %24 : vector<1x1x4x8x8xf32> to vector<4x8x8xf32>
    %26 = vector.shape_cast %23 : vector<4x8x8xf32> to vector<1x1x4x8x8xf32>
    tpu.vector_store %arg3[%c0_6, %c0_7, %c0_8, %c0_9, %c0_10], %26 {strides = array<i32>} : memref<4x1x4x8x8xf32, #tpu.memory_space<vmem>>, vector<1x1x4x8x8xf32>,
    %27 = arith.subf %16, %13 : vector<4x8x8xf32>
    %c1 = arith.constant 1 : index
    %c0_11 = arith.constant 0 : index
    %c0_12 = arith.constant 0 : index
    %c0_13 = arith.constant 0 : index
    %c0_14 = arith.constant 0 : index
    %28 = vector.load %arg3[%c1, %c0_11, %c0_12, %c0_13, %c0_14] : memref<4x1x4x8x8xf32, #tpu.memory_space<vmem>>, vector<1x1x4x8x8xf32>
    %29 = vector.shape_cast %28 : vector<1x1x4x8x8xf32> to vector<4x8x8xf32>
    %30 = vector.shape_cast %27 : vector<4x8x8xf32> to vector<1x1x4x8x8xf32>
    tpu.vector_store %arg3[%c1, %c0_11, %c0_12, %c0_13, %c0_14], %30 {strides = array<i32>} : memref<4x1x4x8x8xf32, #tpu.memory_space<vmem>>, vector<1x1x4x8x8xf32>,
    %31 = arith.addf %19, %22 : vector<4x8x8xf32>
    %c2 = arith.constant 2 : index
    %c0_15 = arith.constant 0 : index
    %c0_16 = arith.constant 0 : index
    %c0_17 = arith.constant 0 : index
    %c0_18 = arith.constant 0 : index
    %32 = vector.load %arg3[%c2, %c0_15, %c0_16, %c0_17, %c0_18] : memref<4x1x4x8x8xf32, #tpu.memory_space<vmem>>, vector<1x1x4x8x8xf32>
    %33 = vector.shape_cast %32 : vector<1x1x4x8x8xf32> to vector<4x8x8xf32>
    %34 = vector.shape_cast %31 : vector<4x8x8xf32> to vector<1x1x4x8x8xf32>
    tpu.vector_store %arg3[%c2, %c0_15, %c0_16, %c0_17, %c0_18], %34 {strides = array<i32>} : memref<4x1x4x8x8xf32, #tpu.memory_space<vmem>>, vector<1x1x4x8x8xf32>,
    %35 = arith.subf %22, %19 : vector<4x8x8xf32>
    %c3 = arith.constant 3 : index
    %c0_19 = arith.constant 0 : index
    %c0_20 = arith.constant 0 : index
    %c0_21 = arith.constant 0 : index
    %c0_22 = arith.constant 0 : index
    %36 = vector.load %arg3[%c3, %c0_19, %c0_20, %c0_21, %c0_22] : memref<4x1x4x8x8xf32, #tpu.memory_space<vmem>>, vector<1x1x4x8x8xf32>
    %37 = vector.shape_cast %36 : vector<1x1x4x8x8xf32> to vector<4x8x8xf32>
    %38 = vector.shape_cast %35 : vector<4x8x8xf32> to vector<1x1x4x8x8xf32>
    tpu.vector_store %arg3[%c3, %c0_19, %c0_20, %c0_21, %c0_22], %38 {strides = array<i32>} : memref<4x1x4x8x8xf32, #tpu.memory_space<vmem>>, vector<1x1x4x8x8xf32>,
    return
  }
  func.func @transform_0(%arg0: i32, %arg1: i32) -> (i32, i32, i32, i32) {
    %c0_i32 = arith.constant 0 : i32
    %c0_i32_0 = arith.constant 0 : i32
    %c0_i32_1 = arith.constant 0 : i32
    return %arg0, %c0_i32, %arg1, %c0_i32_0 : i32, i32, i32, i32
  }
  func.func @transform_1(%arg0: i32, %arg1: i32) -> (i32, i32, i32, i32, i32) {
    %c0_i32 = arith.constant 0 : i32
    %c0_i32_0 = arith.constant 0 : i32
    %c0_i32_1 = arith.constant 0 : i32
    %c0_i32_2 = arith.constant 0 : i32
    return %c0_i32, %arg0, %c0_i32_0, %arg1, %c0_i32_1 : i32, i32, i32, i32, i32
  }
}

</mosaic_0001>

<bundles_post_ra>
// kernel: tpu_custom_call.1
= control target key start
LH: loop header
LB: loop body
LE: loop exit
PB: predicated region body
PF: predicated region fallthrough
CT: control target
= control target key end

     0   :  { %6 = vsyncpa [#allocation3], 0  ;;  %s5548_s0 = inlined_call_operand.hbm [shape: f32[2,4,16,16], index: 0, kind: input, shape index: {}]   ;;  %s5549_s1 = inlined_call_operand.hbm [shape: f32[4,2,4,8,8], index: 1, kind: output, shape index: {}]  }
   0x1   :  { %8 = vsyncpa [#allocation3 + $0x1], 0 }
   0x2   :  { %9 = vsyncpa [#allocation4], 0 }
   0x3   :  { %11 = vsyncpa [#allocation4 + $0x1], 0  ;;  %s3111_s6 = smov 0   ;;  %s3113_s7 = smov 0  }
   0x4   :  { %s3115_s8 = smov 0   ;;  %s3117_s9 = smov 0  }
   0x5   :  { %s3119_s10 = smov 0   ;;  %s3121_s11 = smov 0  }
   0x6 LB: > { %s2864_s12 = sadd.s32 4294967295, %s3077_s11   ;;  %s2865_s13 = sadd.s32 4294967294, %s3077_s11   ;;  %s3077_s11 = sphi %s3121_s11, %s17_s11   ;;  %s3073_s10 = sphi %s3119_s10, %s5976_s10   ;;  %s3069_s9 = sphi %s3117_s9, %s5975_s9   ;;  %s3065_s8 = sphi %s3115_s8, %s5974_s8   ;;  %s3061_s7 = sphi %s3113_s7, %s5973_s7   ;;  %s3057_s6 = sphi %s3111_s6, %s5972_s6  }
   0x7   : > { %s29_s14 = sadd.s32 1, %s3073_s10  ;;  %s38_s15 = sadd.s32 1, %s3065_s8 }
   0x8   : > { %p31_p0 = scmp.ge.s32.totalorder %s29_s14, 2  ;;  %p45_p1 = scmp.ne.s32.totalorder %s3065_s8, %s3061_s7 }
   0x9   : > { %p46_p2 = scmp.eq.s32.totalorder %s3077_s11, 0  ;;  %p51_p3 = scmp.ne.s32.totalorder %s3061_s7, %s3057_s6 }
   0xa   : > { %s5978_s14 = smov (%p31_p0, %s29_s14), 0  ;;  %p52_p5 = scmp.eq.s32.totalorder %s2864_s12, 0 }
   0xb   : > { %p3152_p4 = por %p46_p2, %p45_p1  ;;  %s33_s17 = ssub.s32 %s3073_s10, %s5978_s14 }
   0xc   : > { %p77_p6 = scmp.eq.s32.totalorder %s2864_s12, 1  ;;  %p36_p7 = scmp.eq.s32.totalorder %s33_s17, 0 }
   0xd   : > { %p3158_p8 = por %p52_p5, %p51_p3  ;;  %p83_p10 = scmp.eq.s32.totalorder %s2865_s13, 1 }
   0xe   : > { %p3162_p9 = por %p77_p6, %p45_p1  ;;  %p2867_p12 = scmp.ge.s32.totalorder %s3077_s11, 2 }
   0xf   : > { %s3167_s20 = scalar_select %p36_p7, %s3065_s8, %s38_s15  }
  0x10   : > { %p3169_p11 = por %p83_p10, %p51_p3  ;;  %p2911_p13 = scmp.lt.s32.totalorder %s3077_s11, 2 }
  0x11   : > { %s103_s22 = sand.u32 1, %s3065_s8   ;;  %s2891_s24 = sshll.u32 %s3073_s10, 6 }
  0x12   : > { %s2868_s23 = sshll.u32 %s103_s22, 6  ;;  %s114_s27 = scalar_lea.hbm %s5548_s0, %s2891_s24 }
  0x13   : > { %s107_s28 = scalar_lea.vmem [#allocation2], %s2868_s23  ;;  %s115_s30 = sshll.u32 %s114_s27, 4  ;;  %s116_s30 = int_to_ptr.hbm [resolvable:$true] %s115_s30 }
  0x14   : > { %s117_s29 = sshll.u32 %s107_s28, 4  ;;  %p2904_p0 = pnand %p2911_p13, %p3152_p4  ;;  %s118_s29 = int_to_ptr.vmem [resolvable:$true] %s117_s29 }
  0x15   : > { %p2871_p1 = scmp.ge.s32.totalorder %s3077_s11, 1  ;;  %s104_s2 = scalar_lea.sflag [#allocation3], %s103_s22 }
  0x16   : > { %s3079_s3 = smov 128   ;;  %s3080_s4 = smov 8  }
  0x17   : > { %2906 = dma.hbm_to_vmem [thread:$0]  (!%p2904_p0), %s116_s30, 1024, %s118_s29, %s104_s2, %s3079_s3, %s3079_s3, %s3080_s4  }
  0x18   : > { %p125_p2 = scmp.lt.s32.totalorder %s3077_s11, 3 }
  0x1a   : > { %p126_p3 = pnand %p2871_p1, %p125_p2 }
  0x1c   : > { %129 = sbr.rel (%p126_p3) target bundleno = 1316 (0x524), region = 24 }
  0x21   : > { %s3185_s5 = sand.u32 1, %s3061_s7  }
  0x22   : > { %s2872_s12 = sshll.u32 %s3185_s5, 6  ;;  %s132_s13 = scalar_lea.sflag [#allocation3], %s3185_s5 }
  0x23   : > { %s135_s15 = scalar_lea.vmem [#allocation2], %s2872_s12 }
  0x24   : > { %3048 = dma.done.wait (%p3158_p8), %s132_s13, 1024  }
  0x25   : > { %3050 = vsyncadd (%p3158_p8), %s132_s13, 4294966272  ;;  %v3193_v0 = vld [vmem:[%s135_s15 + $0x20] sm:$0xff]  ;;  %v3195_v1 = vld [vmem:[%s135_s15 + $0x10] sm:$0xff]  ;;  %s3081_s16 = smov 126   ;;  %s3082_s17 = smov 124   ;;  %vm341_vm0 = vcmask 1047556  }
  0x26   : > { %v3197_v2 = vld [vmem:[%s135_s15] sm:$0xff]  ;;  %180 = vrot.lane.b32.xlu2 %v3193_v0, %s3081_s16  ;;  %176 = vrot.lane.b32.xlu1 %v3195_v1, %s3081_s16  ;;  %v3202_v3 = vld [vmem:[%s135_s15 + $0x28] sm:$0xff]  ;;  %s3083_s18 = smov 122   ;;  %s3084_s22 = smov 120   ;;  %v3088_v33 = vmov 1983009808  }
  0x27   : > { %172 = vrot.lane.b32.xlu0 %v3197_v2, %s3081_s16  ;;  %v3204_v4 = vld [vmem:[%s135_s15 + $0x18] sm:$0xff]  ;;  %v3206_v5 = vld [vmem:[%s135_s15 + $0x8] sm:$0xff]  ;;  %v3213_v7 = vld [vmem:[%s135_s15 + $0x30] sm:$0xff]  ;;  %s3085_s23 = smov 118   ;;  %s3086_s24 = smov 116   ;;  %v343_v32 = vrot.slane %v3197_v2, 4  ;;  %v346_v34 = vunpack.c.l.s4 %v3088_v33 }
  0x28   : > { %v3211_v6 = vld [vmem:[%s135_s15 + $0x38] sm:$0xff]  ;;  %s3087_s25 = smov 114   ;;  %v679_v37 = vrot.slane %v3204_v4, 4  ;;  %v1015_v45 = vrot.slane %v3213_v7, 4  ;;  %v3089_v46 = vmov 1934713408  }
  0x29   : > { %v3314_v40 = vunpack.c.0.s8 %v346_v34  ;;  %v394_v47 = vunpack.c.l.s4 %v3089_v46  ;;  %v567_v56 = vrot.slane %v3195_v1, 4  ;;  %v455_v57 = vrot.slane %v3206_v5, 4  ;;  %s3090_s26 = smov 127   ;;  %s3092_s27 = smov 1  }
  0x2a   : > { %v903_v33 = vrot.slane %v3202_v3, 4  ;;  %v791_v34 = vrot.slane %v3193_v0, 4  ;;  %vm1687_vm1 = vcmask 1041409   ;;  %vm1689_vm2 = vcmask 1042434   ;;  %s2873_s28 = sshll.u32 %s3185_s5, 7  ;;  %s2739_s30 = scalar_lea.sflag [#allocation4], %s3185_s5 }
  0x2b   : > { %v3341_v61 = vunpack.c.0.s8 %v394_v47  ;;  %vm1691_vm3 = vcmask 1043459   ;;  %vm1693_vm4 = vcmask 1044484   ;;  %vm1695_vm5 = vcmask 1045509   ;;  %s4721_s29 = scalar_lea.vmem [#allocation5], %s2873_s28 }
  0x2c   : > { %vm1697_vm6 = vcmask 1046534   ;;  %vm1699_vm7 = vcmask 1047559   ;;  %vm1726_vm8 = vcmask 64512  }
  0x2e   : > { %182 = vrot.lane.b32.xlu2 %v3202_v3, %s3081_s16  ;;  %178 = vrot.lane.b32.xlu1 %v3204_v4, %s3081_s16 }
  0x2f   : > { %174 = vrot.lane.b32.xlu0 %v3206_v5, %s3081_s16 }
  0x36   : > { %186 = vrot.lane.b32.xlu1 %v3211_v6, %s3081_s16  ;;  %196 = vrot.lane.b32.xlu2 %v3197_v2, %s3082_s17 }
  0x37   : > { %184 = vrot.lane.b32.xlu0 %v3213_v7, %s3081_s16 }
  0x3e   : > { %200 = vrot.lane.b32.xlu1 %v3195_v1, %s3082_s17  ;;  %202 = vrot.lane.b32.xlu2 %v3204_v4, %s3082_s17 }
  0x3f   : > { %198 = vrot.lane.b32.xlu0 %v3206_v5, %s3082_s17 }
  0x46   : > { %206 = vrot.lane.b32.xlu1 %v3202_v3, %s3082_s17  ;;  %208 = vrot.lane.b32.xlu2 %v3213_v7, %s3082_s17 }
  0x47   : > { %204 = vrot.lane.b32.xlu0 %v3193_v0, %s3082_s17 }
  0x4e   : > { %220 = vrot.lane.b32.xlu1 %v3197_v2, %s3083_s18  ;;  %222 = vrot.lane.b32.xlu2 %v3206_v5, %s3083_s18 }
  0x4f   : > { %210 = vrot.lane.b32.xlu0 %v3211_v6, %s3082_s17 }
  0x56   : > { %226 = vrot.lane.b32.xlu1 %v3204_v4, %s3083_s18  ;;  %228 = vrot.lane.b32.xlu2 %v3193_v0, %s3083_s18 }
  0x57   : > { %224 = vrot.lane.b32.xlu0 %v3195_v1, %s3083_s18 }
  0x5e   : > { %232 = vrot.lane.b32.xlu1 %v3213_v7, %s3083_s18  ;;  %234 = vrot.lane.b32.xlu2 %v3211_v6, %s3083_s18 }
  0x5f   : > { %230 = vrot.lane.b32.xlu0 %v3202_v3, %s3083_s18 }
  0x66   : > { %246 = vrot.lane.b32.xlu1 %v3206_v5, %s3084_s22  ;;  %248 = vrot.lane.b32.xlu2 %v3195_v1, %s3084_s22 }
  0x67   : > { %244 = vrot.lane.b32.xlu0 %v3197_v2, %s3084_s22 }
  0x6e   : > { %252 = vrot.lane.b32.xlu1 %v3193_v0, %s3084_s22  ;;  %254 = vrot.lane.b32.xlu2 %v3202_v3, %s3084_s22 }
  0x6f   : > { %250 = vrot.lane.b32.xlu0 %v3204_v4, %s3084_s22 }
  0x76   : > { %258 = vrot.lane.b32.xlu1 %v3211_v6, %s3084_s22  ;;  %268 = vrot.lane.b32.xlu2 %v3197_v2, %s3085_s23 }
  0x77   : > { %256 = vrot.lane.b32.xlu0 %v3213_v7, %s3084_s22 }
  0x7e   : > { %272 = vrot.lane.b32.xlu1 %v3195_v1, %s3085_s23  ;;  %274 = vrot.lane.b32.xlu2 %v3204_v4, %s3085_s23 }
  0x7f   : > { %270 = vrot.lane.b32.xlu0 %v3206_v5, %s3085_s23 }
  0x80   : > { %v3245_v8 = vpop.permute.xlu2 %180 }
  0x81   : > { %v803_v50 = vrot.slane %v3245_v8, 4 }
  0x86   : > { %278 = vrot.lane.b32.xlu1 %v3202_v3, %s3085_s23  ;;  %280 = vrot.lane.b32.xlu2 %v3213_v7, %s3085_s23 }
  0x87   : > { %276 = vrot.lane.b32.xlu0 %v3193_v0, %s3085_s23 }
  0x88   : > { %v3250_v9 = vpop.permute.xlu2 %182 }
  0x8e   : > { %292 = vrot.lane.b32.xlu1 %v3197_v2, %s3086_s24  ;;  %294 = vrot.lane.b32.xlu2 %v3206_v5, %s3086_s24 }
  0x8f   : > { %282 = vrot.lane.b32.xlu0 %v3211_v6, %s3085_s23 }
  0x90   : > { %v197_v10 = vpop.permute.xlu2 %196 }
  0x91   : > { %v340_v35 = vrot.slane %v197_v10, 4  ;;  %v344_v36 = vsel %vm341_vm0, %v197_v10, %v343_v32 }
  0x92   : > { %v3321_v44 = vperm.slane %v344_v36, %v3314_v40 }
  0x93   : > { %v342_v43 = vsel %vm341_vm0, %v340_v35, %v3197_v2 }
  0x94   : > { %v3328_v52 = vperm.slane %v342_v43, %v3314_v40  ;;  %v403_v58 = vrot.slane %v3321_v44, 4 }
  0x96   : > { %298 = vrot.lane.b32.xlu1 %v3204_v4, %s3086_s24  ;;  %300 = vrot.lane.b32.xlu2 %v3193_v0, %s3086_s24 }
  0x97   : > { %296 = vrot.lane.b32.xlu0 %v3195_v1, %s3086_s24 }
  0x98   : > { %v3258_v11 = vpop.permute.xlu1 %176  ;;  %v203_v12 = vpop.permute.xlu2 %202 }
  0x99   : > { %v3260_v13 = vpop.permute.xlu0 %172  ;;  %v677_v41 = vrot.slane %v203_v12, 4  ;;  %v680_v48 = vsel %vm341_vm0, %v203_v12, %v679_v37 }
  0x9a   : > { %v3338_v59 = vperm.slane %v680_v48, %v3314_v40 }
  0x9b   : > { %v678_v53 = vsel %vm341_vm0, %v677_v41, %v3204_v4  ;;  %v355_v41 = vrot.slane %v3260_v13, 4 }
  0x9c   : > { %v3344_v62 = vperm.slane %v678_v53, %v3314_v40 }
  0x9e   : > { %304 = vrot.lane.b32.xlu1 %v3213_v7, %s3086_s24  ;;  %306 = vrot.lane.b32.xlu2 %v3211_v6, %s3086_s24 }
  0x9f   : > { %302 = vrot.lane.b32.xlu0 %v3202_v3, %s3086_s24 }
  0xa0   : > { %v3265_v14 = vpop.permute.xlu1 %178  ;;  %v209_v15 = vpop.permute.xlu2 %208 }
  0xa1   : > { %v3267_v16 = vpop.permute.xlu0 %174  ;;  %v1013_v49 = vrot.slane %v209_v15, 4  ;;  %v1016_v60 = vsel %vm341_vm0, %v209_v15, %v1015_v45 }
  0xa2   : > { %v467_v54 = vrot.slane %v3267_v16, 4 }
  0xa3   : > { %v1014_v63 = vsel %vm341_vm0, %v1013_v49, %v3213_v7 }
  0xa4   : > { %v3371_v43 = vperm.slane %v1014_v63, %v3314_v40 }
  0xa6   : > { %318 = vrot.lane.b32.xlu1 %v3206_v5, %s3087_s25  ;;  %320 = vrot.lane.b32.xlu2 %v3195_v1, %s3087_s25 }
  0xa7   : > { %316 = vrot.lane.b32.xlu0 %v3197_v2, %s3087_s25 }
  0xa8   : > { %v3272_v17 = vpop.permute.xlu1 %186  ;;  %v3274_v18 = vpop.permute.xlu2 %222 }
  0xa9   : > { %v3276_v19 = vpop.permute.xlu0 %184  ;;  %v465_v55 = vrot.slane %v3274_v18, 4  ;;  %v468_v2 = vsel %vm341_vm0, %v3274_v18, %v467_v54  ;;  %v1139_v63 = vrot.slane %v3272_v17, 4 }
  0xaa   : > { %v476_v45 = vperm.slane %v468_v2, %v3314_v40 }
  0xab   : > { %v466_v18 = vsel %vm341_vm0, %v465_v55, %v3267_v16 }
  0xac   : > { %v3383_v53 = vperm.slane %v466_v18, %v3314_v40  ;;  %v513_v2 = vrot.slane %v476_v45, 4 }
  0xae   : > { %324 = vrot.lane.b32.xlu1 %v3193_v0, %s3087_s25  ;;  %326 = vrot.lane.b32.xlu2 %v3202_v3, %s3087_s25 }
  0xaf   : > { %322 = vrot.lane.b32.xlu0 %v3204_v4, %s3087_s25 }
  0xb0   : > { %v3281_v20 = vpop.permute.xlu1 %200  ;;  %v3283_v21 = vpop.permute.xlu2 %228 }
  0xb1   : > { %v3285_v22 = vpop.permute.xlu0 %198  ;;  %v565_v36 = vrot.slane %v3281_v20, 4  ;;  %v568_v46 = vsel %vm341_vm0, %v3281_v20, %v567_v56  ;;  %v801_v16 = vrot.slane %v3283_v21, 4  ;;  %v804_v54 = vsel %vm341_vm0, %v3283_v21, %v803_v50 }
  0xb2   : > { %v453_v4 = vrot.slane %v3285_v22, 4  ;;  %v456_v37 = vsel %vm341_vm0, %v3285_v22, %v455_v57  ;;  %v691_v22 = vrot.slane %v3265_v14, 4  ;;  %v3392_v57 = vperm.slane %v568_v46, %v3314_v40 }
  0xb3   : > { %v464_v55 = vperm.slane %v456_v37, %v3314_v40  ;;  %v566_v56 = vsel %vm341_vm0, %v565_v36, %v3195_v1  ;;  %v802_v21 = vsel %vm341_vm0, %v801_v16, %v3245_v8  ;;  %v812_v50 = vperm.slane %v804_v54, %v3314_v40 }
  0xb4   : > { %v454_v49 = vsel %vm341_vm0, %v453_v4, %v3206_v5  ;;  %v1127_v5 = vrot.slane %v3211_v6, 4  ;;  %v501_v37 = vrot.slane %v3383_v53, 4  ;;  %v3407_v46 = vperm.slane %v566_v56, %v3314_v40 }
  0xb5   : > { %v460_v4 = vperm.slane %v454_v49, %v3314_v40  ;;  %v627_v54 = vrot.slane %v3392_v57, 4  ;;  %v514_v47 = vsel %vm341_vm0, %v513_v2, %v464_v55  ;;  %v3420_v48 = vperm.slane %v802_v21, %v3314_v40 }
  0xb6   : > { %330 = vrot.lane.b32.xlu1 %v3211_v6, %s3087_s25  ;;  %v849_v15 = vrot.slane %v812_v50, 4 }
  0xb7   : > { %328 = vrot.lane.b32.xlu0 %v3213_v7, %s3087_s25  ;;  %v3362_v7 = vperm.slane %v1016_v60, %v3314_v40  ;;  %v515_v60 = vrot.slane %v464_v55, 4  ;;  %v502_v56 = vsel %vm341_vm0, %v501_v37, %v460_v4  ;;  %v3435_v37 = vperm.slane %v514_v47, %v3341_v61 }
  0xb8   : > { %v3289_v23 = vpop.permute.xlu1 %206  ;;  %v3291_v24 = vpop.permute.xlu2 %234 }
  0xb9   : > { %v3293_v25 = vpop.permute.xlu0 %204  ;;  %v901_v18 = vrot.slane %v3289_v23, 4  ;;  %v1137_v1 = vrot.slane %v3291_v24, 4  ;;  %v1140_v32 = vsel %vm341_vm0, %v3291_v24, %v1139_v63  ;;  %v516_v21 = vsel %vm341_vm0, %v476_v45, %v515_v60  ;;  %5671 = vst [vmem:[#allocation10_spill] sm:$0xff] %v3435_v37 }
  0xba   : > { %v792_v49 = vsel %vm341_vm0, %v3293_v25, %v791_v34  ;;  %v789_v51 = vrot.slane %v3293_v25, 4  ;;  %v904_v34 = vsel %vm341_vm0, %v3289_v23, %v903_v33  ;;  %v3448_v33 = vperm.slane %v502_v56, %v3341_v61 }
  0xbb   : > { %v902_v16 = vsel %vm341_vm0, %v901_v18, %v3202_v3  ;;  %v1138_v55 = vsel %vm341_vm0, %v1137_v1, %v3272_v17  ;;  %v800_v25 = vperm.slane %v792_v49, %v3314_v40  ;;  %v3440_v24 = vperm.slane %v904_v34, %v3314_v40 }
  0xbc   : > { %v3443_v3 = vperm.slane %v1140_v32, %v3314_v40  ;;  %v790_v17 = vsel %vm341_vm0, %v789_v51, %v3193_v0  ;;  %v503_v63 = vrot.slane %v460_v4, 4  ;;  %v3451_v45 = vperm.slane %v902_v16, %v3314_v40 }
  0xbd   : > { %v3454_v47 = vperm.slane %v1138_v55, %v3314_v40  ;;  %v837_v60 = vrot.slane %v3420_v48, 4  ;;  %v3459_v32 = vperm.slane %v516_v21, %v3341_v61  ;;  %v851_v18 = vrot.slane %v800_v25, 4 }
  0xbe   : > { %v3466_v1 = vperm.slane %v790_v17, %v3314_v40  ;;  %v1185_v34 = vrot.slane %v3443_v3, 4  ;;  %v850_v55 = vsel %vm341_vm0, %v849_v15, %v800_v25 }
  0xbf   : > { %5672 = vst [vmem:[#allocation11_spill] sm:$0xff] %v3459_v32  ;;  %v1173_v17 = vrot.slane %v3454_v47, 4 }
  0xc0   : > { %v3295_v26 = vpop.permute.xlu1 %220  ;;  %v3297_v27 = vpop.permute.xlu2 %248  ;;  %v3492_v21 = vsel %vm341_vm0, %v837_v60, %v3466_v1 }
  0xc1   : > { %v3299_v28 = vpop.permute.xlu0 %210  ;;  %v356_v23 = vsel %vm341_vm0, %v3295_v26, %v355_v41  ;;  %v353_v41 = vrot.slane %v3295_v26, 4 }
  0xc2   : > { %v364_v0 = vperm.slane %v356_v23, %v3314_v40  ;;  %v1125_v49 = vrot.slane %v3299_v28, 4  ;;  %v1128_v26 = vsel %vm341_vm0, %v3299_v28, %v1127_v5  ;;  %v504_v28 = vsel %vm341_vm0, %v3383_v53, %v503_v63 }
  0xc3   : > { %v354_v4 = vsel %vm341_vm0, %v353_v41, %v3260_v13  ;;  %v852_v5 = vsel %vm341_vm0, %v812_v50, %v851_v18  ;;  %v1136_v25 = vperm.slane %v1128_v26, %v3314_v40  ;;  %v3495_v13 = vperm.slane %v850_v55, %v3341_v61 }
  0xc4   : > { %v401_v56 = vrot.slane %v364_v0, 4  ;;  %v404_v15 = vsel %vm341_vm0, %v364_v0, %v403_v58  ;;  %v1126_v41 = vsel %vm341_vm0, %v1125_v49, %v3211_v6  ;;  %v360_v63 = vperm.slane %v354_v4, %v3314_v40 }
  0xc5   : > { %5673 = vst [vmem:[#allocation12_spill] sm:$0xff] %v3495_v13  ;;  %v3507_v60 = vperm.slane %v504_v28, %v3341_v61  ;;  %v3510_v18 = vperm.slane %v852_v5, %v3341_v61  ;;  %v3513_v0 = vperm.slane %v404_v15, %v3341_v61  ;;  %v5675_v49 = vrot.slane %v3258_v11, 4 }
  0xc6   : > { %v402_v26 = vsel %vm341_vm0, %v401_v56, %v3321_v44  ;;  %v1186_v55 = vsel %vm341_vm0, %v1185_v34, %v1136_v25  ;;  %v1187_v28 = vrot.slane %v1136_v25, 4  ;;  %v5676_v44 = vrot.slane %v3328_v52, 4 }
  0xc7   : > { %5674 = vst [vmem:[#allocation13_spill] sm:$0xff] %v3510_v18  ;;  %v5679_v15 = vrot.slane %v3338_v59, 4 }
  0xc8   : > { %v3301_v29 = vpop.permute.xlu1 %226  ;;  %v3303_v30 = vpop.permute.xlu2 %254  ;;  %v392_v56 = vsel %vm341_vm0, %v360_v63, %v5676_v44 }
  0xc9   : > { %v3305_v31 = vpop.permute.xlu0 %224  ;;  %v692_v58 = vsel %vm341_vm0, %v3301_v29, %v691_v22  ;;  %v3523_v22 = vperm.slane %v1126_v41, %v3314_v40  ;;  %v689_v23 = vrot.slane %v3301_v29, 4  ;;  %v3540_v41 = vperm.slane %v402_v26, %v3341_v61 }
  0xca   : > { %v577_v6 = vrot.slane %v3305_v31, 4  ;;  %v580_v4 = vsel %vm341_vm0, %v3305_v31, %v5675_v49  ;;  %v700_v50 = vperm.slane %v692_v58, %v3314_v40  ;;  %v389_v49 = vrot.slane %v360_v63, 4 }
  0xcb   : > { %v588_v34 = vperm.slane %v580_v4, %v3314_v40  ;;  %v3544_v29 = vperm.slane %v1186_v55, %v3341_v61  ;;  %v3550_v53 = vsel %vm341_vm0, %v1173_v17, %v3523_v22  ;;  %v1188_v4 = vsel %vm341_vm0, %v3443_v3, %v1187_v28 }
  0xcc   : > { %v578_v58 = vsel %vm341_vm0, %v577_v6, %v3258_v11  ;;  %v5678_v26 = vrot.slane %v3276_v19, 4  ;;  %v690_v55 = vsel %vm341_vm0, %v689_v23, %v3265_v14  ;;  %v740_v11 = vsel %vm341_vm0, %v700_v50, %v5679_v15 }
  0xcd   : > { %5677 = vst [vmem:[#allocation14_spill] sm:$0xff] %v3544_v29  ;;  %v3568_v25 = vperm.slane %v392_v56, %v3341_v61  ;;  %v584_v3 = vperm.slane %v578_v58, %v3314_v40  ;;  %v625_v28 = vrot.slane %v588_v34, 4  ;;  %v737_v15 = vrot.slane %v700_v50, 4 }
  0xce   : > { %v628_v13 = vsel %vm341_vm0, %v588_v34, %v627_v54  ;;  %v3582_v37 = vperm.slane %v1188_v4, %v3341_v61  ;;  %v696_v58 = vperm.slane %v690_v55, %v3314_v40  ;;  %v3591_v50 = vperm.slane %v740_v11, %v3341_v61 }
  0xcf   : > { %v613_v55 = vrot.slane %v584_v3, 4  ;;  %v3602_v23 = vperm.slane %v628_v13, %v3341_v61  ;;  %v5682_v4 = vrot.slane %v3344_v62, 4  ;;  %v5683_v13 = vrot.slane %v3362_v7, 4 }
  0xd0   : > { %v3310_v38 = vpop.permute.xlu1 %232  ;;  %v3312_v39 = vpop.permute.xlu2 %268  ;;  %5681 = vst [vmem:[#allocation15_spill] sm:$0xff] %v3582_v37  ;;  %v5685_v11 = vrot.slane %v3440_v24, 4 }
  0xd1   : > { %v3316_v42 = vpop.permute.xlu0 %230  ;;  %v1028_v44 = vsel %vm341_vm0, %v3310_v38, %v5678_v26  ;;  %v1025_v63 = vrot.slane %v3310_v38, 4  ;;  %v5680_v26 = vrot.slane %v3250_v9, 4 }
  0xd2   : > { %v913_v17 = vrot.slane %v3316_v42, 4  ;;  %v1036_v56 = vperm.slane %v1028_v44, %v3314_v40 }
  0xd3   : > { %v916_v14 = vsel %vm341_vm0, %v3316_v42, %v5680_v26  ;;  %v390_v42 = vsel %vm341_vm0, %v389_v49, %v3328_v52  ;;  %v626_v26 = vsel %vm341_vm0, %v625_v28, %v3392_v57  ;;  %v1026_v52 = vsel %vm341_vm0, %v1025_v63, %v3276_v19 }
  0xd4   : > { %v914_v54 = vsel %vm341_vm0, %v913_v17, %v3250_v9  ;;  %v924_v34 = vperm.slane %v916_v14, %v3314_v40  ;;  %v738_v49 = vsel %vm341_vm0, %v737_v15, %v3338_v59  ;;  %v1073_v9 = vrot.slane %v1036_v56, 4 }
  0xd5   : > { %v3610_v17 = vperm.slane %v390_v42, %v3341_v61  ;;  %v725_v14 = vrot.slane %v696_v58, 4  ;;  %v728_v57 = vsel %vm341_vm0, %v696_v58, %v5682_v4  ;;  %v1076_v28 = vsel %vm341_vm0, %v1036_v56, %v5683_v13 }
  0xd6   : > { %v920_v19 = vperm.slane %v914_v54, %v3314_v40  ;;  %v5684_v63 = vrot.slane %v3407_v46, 4  ;;  %v3623_v15 = vperm.slane %v626_v26, %v3341_v61  ;;  %v3626_v42 = vperm.slane %v1026_v52, %v3314_v40 }
  0xd7   : > { %v964_v58 = vsel %vm341_vm0, %v924_v34, %v5685_v11  ;;  %v3632_v4 = vperm.slane %v738_v49, %v3341_v61  ;;  %v1074_v26 = vsel %vm341_vm0, %v1073_v9, %v3362_v7  ;;  %v3641_v52 = vperm.slane %v1076_v28, %v3341_v61 }
  0xd8   : > { %v3351_v10 = vpop.permute.xlu1 %246  ;;  %v3353_v12 = vpop.permute.xlu2 %274  ;;  %v616_v59 = vsel %vm341_vm0, %v584_v3, %v5684_v63  ;;  %v614_v3 = vsel %vm341_vm0, %v613_v55, %v3407_v46  ;;  %v961_v13 = vrot.slane %v924_v34, 4  ;;  %v949_v38 = vrot.slane %v920_v19, 4 }
  0xd9   : > { %v3359_v35 = vpop.permute.xlu0 %244  ;;  %5686 = vst [vmem:[#allocation16_spill] sm:$0xff] %v3641_v52  ;;  %v3648_v56 = vperm.slane %v964_v58, %v3341_v61  ;;  %v3653_v46 = vperm.slane %v616_v59, %v3341_v61  ;;  %v1061_v7 = vrot.slane %v3626_v42, 4  ;;  %v3659_v34 = vperm.slane %v614_v3, %v3341_v61 }
  0xda   : > { %v726_v28 = vsel %vm341_vm0, %v725_v14, %v3344_v62  ;;  %v5688_v58 = vrot.slane %v3371_v43, 4  ;;  %v3669_v59 = vperm.slane %v1074_v26, %v3341_v61  ;;  %v5690_v49 = vrot.slane %v3466_v1, 4 }
  0xdb   : > { %5687 = vst [vmem:[#allocation17_spill] sm:$0xff] %v3648_v56  ;;  %v5691_v3 = vrot.slane %v3523_v22, 4  ;;  %v5692_v14 = vrot.slane %v3451_v45, 4  ;;  %v3686_v26 = vperm.slane %v728_v57, %v3341_v61  ;;  %v950_v22 = vsel %vm341_vm0, %v949_v38, %v3451_v45 }
  0xdc   : > { %v1064_v11 = vsel %vm341_vm0, %v3626_v42, %v5688_v58  ;;  %5689 = vst [vmem:[#allocation18_spill] sm:$0xff] %v3669_v59  ;;  %v840_v37 = vsel %vm341_vm0, %v3420_v48, %v5690_v49  ;;  %v962_v42 = vsel %vm341_vm0, %v961_v13, %v3440_v24  ;;  %v3690_v48 = vperm.slane %v726_v28, %v3341_v61 }
  0xdd   : > { %v1176_v9 = vsel %vm341_vm0, %v3454_v47, %v5691_v3  ;;  %v952_v29 = vsel %vm341_vm0, %v920_v19, %v5692_v14  ;;  %v3694_v47 = vperm.slane %v3492_v21, %v3341_v61  ;;  %v3700_v49 = vperm.slane %v840_v37, %v3341_v61 }
  0xde   : > { %v3704_v24 = vperm.slane %v3550_v53, %v3341_v61  ;;  %v3707_v57 = vperm.slane %v1176_v9, %v3341_v61  ;;  %v3710_v13 = vperm.slane %v962_v42, %v3341_v61  ;;  %v479_v21 = vrot.slane %v3351_v10, 4 }
  0xdf   : > { %v367_v38 = vrot.slane %v3359_v35, 4  ;;  %v3719_v53 = vperm.slane %v950_v22, %v3341_v61  ;;  %v3729_v37 = vperm.slane %v952_v29, %v3341_v61  ;;  %v1062_v56 = vsel %vm341_vm0, %v1061_v7, %v3371_v43 }
  0xe0   : > { %v3403_v36 = vpop.permute.xlu1 %252  ;;  %v3411_v20 = vpop.permute.xlu2 %280  ;;  %5693 = vst [vmem:[#allocation19_spill] sm:$0xff] %v3704_v24  ;;  %v5699_v7 = vrot.slane %v3297_v27, 4 }
  0xe1   : > { %v3413_v8 = vpop.permute.xlu0 %250  ;;  %5694 = vst [vmem:[#allocation20_spill] sm:$0xff] %v3707_v57  ;;  %v815_v19 = vrot.slane %v3403_v36, 4  ;;  %v3745_v57 = vperm.slane %v1064_v11, %v3341_v61 }
  0xe2   : > { %5695 = vst [vmem:[#allocation21_spill] sm:$0xff] %v3710_v13  ;;  %v703_v14 = vrot.slane %v3413_v8, 4 }
  0xe3   : > { %5696 = vst [vmem:[#allocation22_spill] sm:$0xff] %v3719_v53 }
  0xe4   : > { %5697 = vst [vmem:[#allocation23_spill] sm:$0xff] %v3729_v37  ;;  %v5702_v37 = vrot.slane %v3303_v30, 4 }
  0xe5   : > { %5698 = vst [vmem:[#allocation24_spill] sm:$0xff] %v3745_v57 }
  0xe8   : > { %v3462_v51 = vpop.permute.xlu1 %258  ;;  %v3481_v2 = vpop.permute.xlu2 %294 }
  0xe9   : > { %v3471_v16 = vpop.permute.xlu0 %256  ;;  %v477_v9 = vrot.slane %v3481_v2, 4  ;;  %v480_v1 = vsel %vm341_vm0, %v3481_v2, %v479_v21  ;;  %v1151_v42 = vrot.slane %v3462_v51, 4 }
  0xea   : > { %v3754_v52 = vperm.slane %v480_v1, %v3314_v40 }
  0xeb   : > { %v478_v58 = vsel %vm341_vm0, %v477_v9, %v3351_v10 }
  0xec   : > { %v3760_v13 = vperm.slane %v478_v58, %v3314_v40 }
  0xf0   : > { %v3526_v5 = vpop.permute.xlu1 %272  ;;  %v3565_v6 = vpop.permute.xlu2 %300 }
  0xf1   : > { %v3532_v31 = vpop.permute.xlu0 %270  ;;  %v603_v28 = vrot.slane %v3526_v5, 4  ;;  %v813_v29 = vrot.slane %v3565_v6, 4  ;;  %v816_v11 = vsel %vm341_vm0, %v3565_v6, %v815_v19 }
  0xf2   : > { %v3776_v58 = vperm.slane %v816_v11, %v3314_v40 }
  0xf3   : > { %v814_v43 = vsel %vm341_vm0, %v813_v29, %v3403_v36 }
  0xf8   : > { %v3586_v32 = vpop.permute.xlu1 %278  ;;  %v3643_v63 = vpop.permute.xlu2 %306 }
  0xf9   : > { %v3596_v44 = vpop.permute.xlu0 %276  ;;  %v1149_v2 = vrot.slane %v3643_v63, 4 }
  0xfb   : > { %v1150_v36 = vsel %vm341_vm0, %v1149_v2, %v3462_v51 }
 0x100   : > { %v3650_v54 = vpop.permute.xlu1 %292  ;;  %v321_v62 = vpop.permute.xlu2 %320 }
 0x101   : > { %v3656_v55 = vpop.permute.xlu0 %282  ;;  %v601_v22 = vrot.slane %v321_v62, 4  ;;  %v604_v21 = vsel %vm341_vm0, %v321_v62, %v603_v28  ;;  %v3768_v28 = vperm.slane %v1062_v56, %v3341_v61  ;;  %v365_v1 = vrot.slane %v3650_v54, 4 }
 0x102   : > { %v612_v6 = vperm.slane %v604_v21, %v3314_v40 }
 0x103   : > { %5700 = vst [vmem:[#allocation25_spill] sm:$0xff] %v3768_v28  ;;  %v602_v24 = vsel %vm341_vm0, %v601_v22, %v3526_v5  ;;  %v368_v5 = vsel %vm341_vm0, %v3650_v54, %v367_v38 }
 0x104   : > { %v649_v38 = vrot.slane %v612_v6, 4  ;;  %v3810_v29 = vperm.slane %v368_v5, %v3314_v40 }
 0x108   : > { %v3722_v3 = vpop.permute.xlu1 %298 }
 0x109   : > { %v297_v45 = vpop.permute.xlu0 %296  ;;  %v701_v5 = vrot.slane %v3722_v3, 4  ;;  %v704_v51 = vsel %vm341_vm0, %v3722_v3, %v703_v14 }
 0x10a   : > { %v589_v9 = vrot.slane %v297_v45, 4  ;;  %v592_v62 = vsel %vm341_vm0, %v297_v45, %v5699_v7  ;;  %v1152_v45 = vsel %vm341_vm0, %v3643_v63, %v1151_v42  ;;  %v3786_v7 = vperm.slane %v814_v43, %v3314_v40 }
 0x10b   : > { %v600_v21 = vperm.slane %v592_v62, %v3314_v40  ;;  %v3796_v42 = vperm.slane %v602_v24, %v3314_v40  ;;  %v3800_v43 = vperm.slane %v1150_v36, %v3314_v40  ;;  %v3803_v54 = vperm.slane %v1152_v45, %v3314_v40  ;;  %v327_v24 = vpop.permute.xlu2 %326 }
 0x10c   : > { %v590_v22 = vsel %vm341_vm0, %v589_v9, %v3297_v27  ;;  %v366_v27 = vsel %vm341_vm0, %v365_v1, %v3359_v35  ;;  %v491_v62 = vrot.slane %v3532_v31, 4  ;;  %v939_v45 = vrot.slane %v3586_v32, 4 }
 0x10d   : > { %v3813_v19 = vperm.slane %v590_v22, %v3314_v40  ;;  %v650_v35 = vsel %vm341_vm0, %v649_v38, %v600_v21  ;;  %v3820_v1 = vperm.slane %v366_v27, %v3314_v40  ;;  %v637_v9 = vrot.slane %v3796_v42, 4 }
 0x10e   : > { %v937_v10 = vrot.slane %v327_v24, 4  ;;  %v940_v38 = vsel %vm341_vm0, %v327_v24, %v939_v45  ;;  %v656_v59 = vperm.slane %v650_v35, %v3341_v61  ;;  %v3835_v28 = vperm.slane %v704_v51, %v3314_v40 }
 0x10f   : > { %v638_v27 = vsel %vm341_vm0, %v637_v9, %v3813_v19  ;;  %v651_v3 = vrot.slane %v600_v21, 4  ;;  %v5701_v22 = vrot.slane %v3312_v39, 4  ;;  %v415_v63 = vrot.slane %v3820_v1, 4 }
 0x110   : > { %v305_v11 = vpop.permute.xlu1 %304  ;;  %v702_v24 = vsel %vm341_vm0, %v701_v5, %v3413_v8  ;;  %v938_v35 = vsel %vm341_vm0, %v937_v10, %v3586_v32  ;;  %v948_v51 = vperm.slane %v940_v38, %v3314_v40  ;;  %v5703_v38 = vrot.slane %v3471_v16, 4 }
 0x111   : > { %v3782_v56 = vpop.permute.xlu0 %302  ;;  %v1037_v45 = vrot.slane %v305_v11, 4  ;;  %v3861_v32 = vperm.slane %v702_v24, %v3314_v40  ;;  %v3878_v18 = vperm.slane %v938_v35, %v3314_v40 }
 0x112   : > { %v928_v8 = vsel %vm341_vm0, %v3782_v56, %v5702_v37  ;;  %v925_v37 = vrot.slane %v3782_v56, 4 }
 0x113   : > { %v936_v24 = vperm.slane %v928_v8, %v3314_v40 }
 0x118   : > { %v319_v21 = vpop.permute.xlu1 %318 }
 0x119   : > { %v317_v57 = vpop.permute.xlu0 %316 }
 0x11a   : > { %v377_v14 = vrot.slane %v317_v57, 4  ;;  %v380_v36 = vsel %vm341_vm0, %v317_v57, %v5701_v22  ;;  %v644_v57 = vperm.slane %v638_v27, %v3341_v61  ;;  %v669_v22 = vrot.slane %v656_v59, 4 }
 0x11b   : > { %v3844_v9 = vperm.slane %v380_v36, %v3314_v40  ;;  %v1040_v27 = vsel %vm341_vm0, %v305_v11, %v5703_v38  ;;  %v985_v11 = vrot.slane %v948_v51, 4  ;;  %v492_v38 = vsel %vm341_vm0, %v319_v21, %v491_v62 }
 0x11c   : > { %v378_v2 = vsel %vm341_vm0, %v377_v14, %v3312_v39  ;;  %v652_v39 = vsel %vm341_vm0, %v612_v6, %v651_v3  ;;  %v1038_v14 = vsel %vm341_vm0, %v1037_v45, %v3471_v16  ;;  %v661_v3 = vrot.slane %v644_v57, 4 }
 0x11d   : > { %v3857_v36 = vperm.slane %v378_v2, %v3314_v40  ;;  %v425_v5 = vrot.slane %v3844_v9, 4  ;;  %v489_v2 = vrot.slane %v319_v21, 4  ;;  %v3883_v56 = vsel %vm341_vm0, %v669_v22, %v3623_v15 }
 0x11e   : > { %5704 = vst [vmem:[#allocation26_spill] sm:$0xff] %v3883_v56  ;;  %v660_v45 = vperm.slane %v652_v39, %v3341_v61  ;;  %v3888_v8 = vperm.slane %v1040_v27, %v3314_v40  ;;  %v3896_v35 = vperm.slane %v1038_v14, %v3314_v40  ;;  %v986_v39 = vsel %vm341_vm0, %v985_v11, %v936_v24 }
 0x11f   : > { %v416_v53 = vsel %vm341_vm0, %v3857_v36, %v415_v63  ;;  %v426_v10 = vsel %vm341_vm0, %v425_v5, %v3810_v29  ;;  %v490_v22 = vsel %vm341_vm0, %v489_v2, %v3532_v31  ;;  %v973_v14 = vrot.slane %v3878_v18, 4 }
 0x120   : > { %v424_v6 = vperm.slane %v416_v53, %v3341_v61  ;;  %v432_v16 = vperm.slane %v426_v10, %v3341_v61  ;;  %v5705_v53 = vrot.slane %v3623_v15, 4  ;;  %v926_v10 = vsel %vm341_vm0, %v925_v37, %v3303_v30  ;;  %v325_v11 = vpop.permute.xlu1 %324 }
 0x121   : > { %v3906_v15 = vsel %vm341_vm0, %v661_v3, %v3659_v34  ;;  %v987_v30 = vrot.slane %v936_v24, 4  ;;  %v3913_v31 = vperm.slane %v926_v10, %v3314_v40  ;;  %v496_v62 = vperm.slane %v490_v22, %v3314_v40 }
 0x122   : > { %v3893_v5 = vsel %vm341_vm0, %v656_v59, %v5705_v53  ;;  %v441_v27 = vrot.slane %v424_v6, 4  ;;  %5707 = vst [vmem:[#allocation28_spill] sm:$0xff] %v3906_v15  ;;  %v639_v53 = vrot.slane %v3813_v19, 4  ;;  %v445_v37 = vrot.slane %v432_v16, 4 }
 0x123   : > { %5706 = vst [vmem:[#allocation27_spill] sm:$0xff] %v3893_v5  ;;  %v1247_v59 = vadd.f32 %v3893_v5, %v3883_v56  ;;  %v500_v21 = vperm.slane %v492_v38, %v3314_v40  ;;  %v5708_v2 = vrot.slane %v3659_v34, 4  ;;  %v3925_v19 = vperm.slane %v986_v39, %v3341_v61 }
 0x124   : > { %v3931_v10 = vsel %vm341_vm0, %v441_v27, %v3568_v25  ;;  %v5711_v22 = vrot.slane %v3568_v25, 4  ;;  %v673_v38 = vrot.slane %v660_v45, 4  ;;  %v413_v39 = vrot.slane %v3857_v36, 4 }
 0x125   : > { %v3920_v3 = vsel %vm341_vm0, %v644_v57, %v5708_v2  ;;  %5710 = vst [vmem:[#allocation30_spill] sm:$0xff] %v3931_v10  ;;  %v3938_v57 = vmul.f32 0.5, %v1247_v59  ;;  %v988_v2 = vsel %vm341_vm0, %v948_v51, %v987_v30  ;;  %v3946_v27 = vsel %vm341_vm0, %v445_v37, %v3540_v41 }
 0x126   : > { %5709 = vst [vmem:[#allocation29_spill] sm:$0xff] %v3920_v3  ;;  %v1245_v24 = vadd.f32 %v3920_v3, %v3906_v15  ;;  %v3936_v34 = vsel %vm341_vm0, %v424_v6, %v5711_v22  ;;  %v3950_v25 = vsel %vm341_vm0, %v973_v14, %v3913_v31  ;;  %v525_v6 = vrot.slane %v496_v62, 4 }
 0x127   : > { %5712 = vst [vmem:[#allocation31_spill] sm:$0xff] %v3936_v34  ;;  %v1238_v63 = vadd.f32 %v3936_v34, %v3931_v10  ;;  %v537_v59 = vrot.slane %v500_v21, 4  ;;  %v5715_v22 = vrot.slane %v3754_v52, 4  ;;  %v5716_v30 = vrot.slane %v3810_v29, 4  ;;  %v323_v34 = vpop.permute.xlu0 %322 }
 0x128   : > { %5713 = vst [vmem:[#allocation32_spill] sm:$0xff] %v3938_v57  ;;  %v5718_v37 = vrot.slane %v3540_v41, 4  ;;  %v3968_v3 = vperm.slane %v988_v2, %v3341_v61  ;;  %v825_v15 = vrot.slane %v325_v11, 4  ;;  %v3974_v29 = vsel %vm341_vm0, %v673_v38, %v3602_v23 }
 0x129   : > { %5714 = vst [vmem:[#allocation33_spill] sm:$0xff] %v3946_v27  ;;  %v540_v51 = vsel %vm341_vm0, %v500_v21, %v5715_v22  ;;  %v428_v5 = vsel %vm341_vm0, %v3844_v9, %v5716_v30  ;;  %v3960_v56 = vmul.f32 0.5, %v1238_v63  ;;  %v414_v41 = vsel %vm341_vm0, %v413_v39, %v3820_v1 }
 0x12a   : > { %v3965_v14 = vsel %vm341_vm0, %v432_v16, %v5718_v37  ;;  %5720 = vst [vmem:[#allocation36_spill] sm:$0xff] %v3974_v29  ;;  %v3977_v9 = vperm.slane %v540_v51, %v3341_v61  ;;  %v5721_v16 = vrot.slane %v3602_v23, 4  ;;  %v640_v2 = vsel %vm341_vm0, %v3796_v42, %v639_v53 }
 0x12b   : > { %5717 = vst [vmem:[#allocation34_spill] sm:$0xff] %v3960_v56  ;;  %v1239_v21 = vadd.f32 %v3965_v14, %v3946_v27  ;;  %1399 = vrot.lane.b32.xlu0 %v3960_v56, %s3090_s26  ;;  %v5723_v38 = vrot.slane %v3760_v13, 4  ;;  %v538_v51 = vsel %vm341_vm0, %v537_v59, %v3754_v52  ;;  %v436_v30 = vperm.slane %v428_v5, %v3341_v61 }
 0x12c   : > { %5719 = vst [vmem:[#allocation35_spill] sm:$0xff] %v3965_v14  ;;  %v3986_v63 = vsel %vm341_vm0, %v660_v45, %v5721_v16  ;;  %v526_v1 = vsel %vm341_vm0, %v525_v6, %v3760_v13  ;;  %v5724_v23 = vrot.slane %v3596_v44, 4  ;;  %v713_v39 = vrot.slane %v323_v34, 4 }
 0x12d   : > { %5722 = vst [vmem:[#allocation37_spill] sm:$0xff] %v3986_v63  ;;  %v528_v22 = vsel %vm341_vm0, %v496_v62, %v5723_v38  ;;  %v4001_v37 = vmul.f32 0.5, %v1245_v24  ;;  %v4005_v42 = vadd.f32 %v3986_v63, %v3974_v29  ;;  %v826_v53 = vsel %vm341_vm0, %v825_v15, %v3596_v44  ;;  %v331_v38 = vpop.permute.xlu1 %330 }
 0x12e   : > { %v828_v45 = vsel %vm341_vm0, %v325_v11, %v5724_v23  ;;  %v5726_v52 = vrot.slane %v3353_v12, 4  ;;  %v4012_v62 = vmul.f32 0.5, %v1239_v21  ;;  %v420_v13 = vperm.slane %v414_v41, %v3341_v61 }
 0x12f   : > { %5725 = vst [vmem:[#allocation38_spill] sm:$0xff] %v4001_v37  ;;  %v4016_v11 = vperm.slane %v538_v51, %v3341_v61  ;;  %v532_v24 = vperm.slane %v526_v1, %v3341_v61  ;;  %v536_v6 = vperm.slane %v528_v22, %v3341_v61  ;;  %v4021_v59 = vperm.slane %v640_v2, %v3341_v61  ;;  %v5846_v10 = vld [vmem:[#allocation32_spill] sm:$0xff] }
 0x130   : > { %v716_v5 = vsel %vm341_vm0, %v323_v34, %v5726_v52  ;;  %5727 = vst [vmem:[#allocation39_spill] sm:$0xff] %v4012_v62  ;;  %v561_v44 = vrot.slane %v3977_v9, 4  ;;  %v449_v15 = vrot.slane %v436_v30, 4  ;;  %v836_v16 = vperm.slane %v828_v45, %v3314_v40  ;;  %1401 = vrot.lane.b32.xlu1 %v4012_v62, %s3090_s26 }
 0x131   : > { %v437_v34 = vrot.slane %v420_v13, 4  ;;  %v832_v21 = vperm.slane %v826_v53, %v3314_v40  ;;  %v724_v41 = vperm.slane %v716_v5, %v3314_v40  ;;  %v549_v51 = vrot.slane %v532_v24, 4 }
 0x132   : > { %v553_v1 = vrot.slane %v536_v6, 4  ;;  %v714_v2 = vsel %vm341_vm0, %v713_v39, %v3353_v12  ;;  %v5728_v23 = vrot.slane %v3610_v17, 4  ;;  %v5729_v52 = vrot.slane %v3448_v33, 4 }
 0x133   : > { %v4033_v22 = vsel %vm341_vm0, %v437_v34, %v3610_v17  ;;  %v4049_v12 = vsel %vm341_vm0, %v549_v51, %v3448_v33  ;;  %v5733_v17 = vrot.slane %v3507_v60, 4  ;;  %v5735_v34 = vrot.slane %v3776_v58, 4 }
 0x134   : > { %v4038_v45 = vsel %vm341_vm0, %v420_v13, %v5728_v23  ;;  %v4043_v53 = vsel %vm341_vm0, %v532_v24, %v5729_v52  ;;  %5731 = vst [vmem:[#allocation41_spill] sm:$0xff] %v4049_v12  ;;  %v4053_v39 = vsel %vm341_vm0, %v553_v1, %v3507_v60  ;;  %v5736_v23 = vrot.slane %v3656_v55, 4 }
 0x135   : > { %5730 = vst [vmem:[#allocation40_spill] sm:$0xff] %v4043_v53  ;;  %v1237_v5 = vadd.f32 %v4038_v45, %v4033_v22  ;;  %v4058_v13 = vsel %vm341_vm0, %v536_v6, %v5733_v17  ;;  %v876_v24 = vsel %vm341_vm0, %v836_v16, %v5735_v34  ;;  %v1241_v33 = vadd.f32 %v4043_v53, %v4049_v12  ;;  %v329_v6 = vpop.permute.xlu0 %328  ;;  %v5811_v53 = vld [vmem:[#allocation24_spill] sm:$0xff] }
 0x136   : > { %5732 = vst [vmem:[#allocation42_spill] sm:$0xff] %v4053_v39  ;;  %v1164_v52 = vsel %vm341_vm0, %v331_v38, %v5736_v23  ;;  %v1242_v51 = vadd.f32 %v4058_v13, %v4053_v39  ;;  %v873_v1 = vrot.slane %v836_v16, 4  ;;  %v720_v60 = vperm.slane %v714_v2, %v3314_v40 }
 0x137   : > { %5734 = vst [vmem:[#allocation43_spill] sm:$0xff] %v4058_v13  ;;  %v761_v36 = vrot.slane %v724_v41, 4  ;;  %v4071_v17 = vmul.f32 0.5, %v1237_v5  ;;  %v1161_v63 = vrot.slane %v331_v38, 4  ;;  %v4073_v29 = vmul.f32 0.5, %v1241_v33  ;;  %v5741_v38 = vld [vmem:[#allocation11_spill] sm:$0xff] }
 0x138   : > { %v4075_v34 = vmul.f32 0.5, %v1242_v51  ;;  %v4079_v23 = vsel %vm341_vm0, %v449_v15, %v3513_v0  ;;  %v4082_v62 = vperm.slane %v876_v24, %v3341_v61  ;;  %v5740_v16 = vrot.slane %v3835_v28, 4 }
 0x139   : > { %5737 = vst [vmem:[#allocation44_spill] sm:$0xff] %v4071_v17  ;;  %v1172_v56 = vperm.slane %v1164_v52, %v3314_v40  ;;  %1397 = vrot.lane.b32.xlu2 %v4071_v17, %s3090_s26  ;;  %v4092_v5 = vsel %vm341_vm0, %v561_v44, %v5741_v38  ;;  %v861_v33 = vrot.slane %v832_v21, 4  ;;  %v1049_v51 = vrot.slane %v329_v6, 4  ;;  %1405 = vrot.lane.b32.xlu0 %v4073_v29, %s3090_s26 }
 0x13a   : > { %5738 = vst [vmem:[#allocation45_spill] sm:$0xff] %v4073_v29  ;;  %v764_v2 = vsel %vm341_vm0, %v724_v41, %v5740_v16  ;;  %v5743_v15 = vrot.slane %v3411_v20, 4  ;;  %1407 = vrot.lane.b32.xlu1 %v4075_v34, %s3090_s26  ;;  %v5744_v41 = vrot.slane %v3513_v0, 4  ;;  %v874_v44 = vsel %vm341_vm0, %v873_v1, %v3776_v58 }
 0x13b   : > { %5739 = vst [vmem:[#allocation46_spill] sm:$0xff] %v4075_v34  ;;  %v749_v16 = vrot.slane %v720_v60, 4  ;;  %v762_v34 = vsel %vm341_vm0, %v761_v36, %v3835_v28  ;;  %v1162_v0 = vsel %vm341_vm0, %v1161_v63, %v3656_v55  ;;  %v557_v58 = vrot.slane %v4016_v11, 4 }
 0x13c   : > { %5742 = vst [vmem:[#allocation11_spill] sm:$0xff] %v4092_v5  ;;  %v1052_v24 = vsel %vm341_vm0, %v329_v6, %v5743_v15  ;;  %v4104_v52 = vsel %vm341_vm0, %v436_v30, %v5744_v41  ;;  %v5745_v6 = vrot.slane %v5741_v38, 4  ;;  %v5747_v1 = vrot.slane %v3786_v7, 4 }
 0x13d   : > { %v1240_v17 = vadd.f32 %v4104_v52, %v4079_v23  ;;  %v4127_v38 = vperm.slane %v764_v2, %v3341_v61  ;;  %v1060_v28 = vperm.slane %v1052_v24, %v3314_v40  ;;  %v4134_v55 = vperm.slane %v874_v44, %v3341_v61 }
 0x13e   : > { %v4114_v15 = vsel %vm341_vm0, %v3977_v9, %v5745_v6  ;;  %v864_v41 = vsel %vm341_vm0, %v832_v21, %v5747_v1  ;;  %v5748_v9 = vrot.slane %v3803_v54, 4  ;;  %v5749_v36 = vrot.slane %v3861_v32, 4 }
 0x13f   : > { %5746 = vst [vmem:[#allocation47_spill] sm:$0xff] %v4114_v15  ;;  %v1244_v30 = vadd.f32 %v4114_v15, %v4092_v5  ;;  %v1209_v29 = vrot.slane %v1172_v56, 4  ;;  %v1050_v21 = vsel %vm341_vm0, %v1049_v51, %v3411_v20  ;;  %v768_v2 = vperm.slane %v762_v34, %v3341_v61 }
 0x140   : > { %v1212_v6 = vsel %vm341_vm0, %v1172_v56, %v5748_v9  ;;  %v752_v63 = vsel %vm341_vm0, %v720_v60, %v5749_v36  ;;  %v4143_v1 = vperm.slane %v1162_v0, %v3314_v40  ;;  %v4145_v15 = vmul.f32 0.5, %v1240_v17  ;;  %v5752_v60 = vld [vmem:[#allocation10_spill] sm:$0xff] }
 0x141   : > { %v750_v24 = vsel %vm341_vm0, %v749_v16, %v3861_v32  ;;  %v4150_v44 = vperm.slane %v1212_v6, %v3341_v61  ;;  %v4152_v9 = vmul.f32 0.5, %v1244_v30  ;;  %v4156_v56 = vsel %vm341_vm0, %v557_v58, %v5752_v60 }
 0x142   : > { %5750 = vst [vmem:[#allocation48_spill] sm:$0xff] %v4145_v15  ;;  %v862_v20 = vsel %vm341_vm0, %v861_v33, %v3786_v7  ;;  %v1056_v34 = vperm.slane %v1050_v21, %v3314_v40  ;;  %v1097_v51 = vrot.slane %v1060_v28, 4  ;;  %v5754_v17 = vrot.slane %v3888_v8, 4  ;;  %1403 = vrot.lane.b32.xlu2 %v4145_v15, %s3090_s26  ;;  %1413 = vrot.lane.b32.xlu1 %v4001_v37, %s3090_s26 }
 0x143   : > { %5751 = vst [vmem:[#allocation49_spill] sm:$0xff] %v4152_v9  ;;  %v760_v32 = vperm.slane %v752_v63, %v3341_v61  ;;  %v1210_v30 = vsel %vm341_vm0, %v1209_v29, %v3803_v54  ;;  %1411 = vrot.lane.b32.xlu0 %v4152_v9, %s3090_s26  ;;  %v5755_v40 = vrot.slane %v5752_v60, 4  ;;  %v756_v33 = vperm.slane %v750_v24, %v3341_v61 }
 0x144   : > { %5753 = vst [vmem:[#allocation10_spill] sm:$0xff] %v4156_v56  ;;  %v1100_v0 = vsel %vm341_vm0, %v1060_v28, %v5754_v17  ;;  %v665_v6 = vrot.slane %v4021_v59, 4  ;;  %v868_v54 = vperm.slane %v862_v20, %v3341_v61  ;;  %v872_v29 = vperm.slane %v864_v41, %v3341_v61 }
 0x145   : > { %v4178_v7 = vsel %vm341_vm0, %v4016_v11, %v5755_v40  ;;  %v897_v28 = vrot.slane %v4082_v62, 4  ;;  %v785_v36 = vrot.slane %v4127_v38, 4  ;;  %v5756_v11 = vrot.slane %v3800_v43, 4 }
 0x146   : > { %v1243_v58 = vadd.f32 %v4178_v7, %v4156_v56  ;;  %v1098_v24 = vsel %vm341_vm0, %v1097_v51, %v3888_v8  ;;  %v4198_v60 = vperm.slane %v1100_v0, %v3341_v61  ;;  %v777_v20 = vrot.slane %v760_v32, 4 }
 0x147   : > { %v4193_v21 = vsel %vm341_vm0, %v4143_v1, %v5756_v11  ;;  %v781_v41 = vrot.slane %v768_v2, 4  ;;  %v4201_v17 = vperm.slane %v1210_v30, %v3341_v61  ;;  %v1085_v16 = vrot.slane %v1056_v34, 4 }
 0x148   : > { %v773_v63 = vrot.slane %v756_v33, 4  ;;  %v4204_v37 = vmul.f32 0.5, %v1243_v58  ;;  %v4208_v11 = vsel %vm341_vm0, %v665_v6, %v3653_v46  ;;  %v885_v9 = vrot.slane %v868_v54, 4 }
 0x149   : > { %v889_v8 = vrot.slane %v872_v29, 4  ;;  %v5758_v51 = vrot.slane %v3896_v35, 4  ;;  %v4214_v15 = vperm.slane %v1098_v24, %v3341_v61  ;;  %v4217_v30 = vmul.f32 0.5, %v4005_v42 }
 0x14a   : > { %5757 = vst [vmem:[#allocation50_spill] sm:$0xff] %v4204_v37  ;;  %v5760_v40 = vrot.slane %v3653_v46, 4  ;;  %1409 = vrot.lane.b32.xlu2 %v4204_v37, %s3090_s26  ;;  %v4229_v6 = vsel %vm341_vm0, %v777_v20, %v3686_v26  ;;  %v5763_v42 = vrot.slane %v3632_v4, 4  ;;  %v5765_v46 = vrot.slane %v3913_v31, 4  ;;  %v5786_v37 = vld [vmem:[#allocation22_spill] sm:$0xff] }
 0x14b   : > { %v1088_v0 = vsel %vm341_vm0, %v1056_v34, %v5758_v51  ;;  %5759 = vst [vmem:[#allocation51_spill] sm:$0xff] %v4217_v30  ;;  %v4233_v34 = vsel %vm341_vm0, %v781_v41, %v3632_v4  ;;  %1417 = vrot.lane.b32.xlu0 %v3938_v57, %s3090_s26  ;;  %1419 = vrot.lane.b32.xlu1 %v4217_v30, %s3090_s26 }
 0x14c   : > { %v4223_v58 = vsel %vm341_vm0, %v4021_v59, %v5760_v40  ;;  %5761 = vst [vmem:[#allocation52_spill] sm:$0xff] %v4229_v6  ;;  %v4238_v24 = vsel %vm341_vm0, %v768_v2, %v5763_v42  ;;  %v976_v59 = vsel %vm341_vm0, %v3878_v18, %v5765_v46  ;;  %v1121_v40 = vrot.slane %v4198_v60, 4 }
 0x14d   : > { %5762 = vst [vmem:[#allocation53_spill] sm:$0xff] %v4233_v34  ;;  %v1246_v20 = vadd.f32 %v4223_v58, %v4208_v11  ;;  %v4253_v4 = vsel %vm341_vm0, %v773_v63, %v3690_v48  ;;  %v1086_v31 = vsel %vm341_vm0, %v1085_v16, %v3896_v35  ;;  %v5766_v18 = vrot.slane %v3686_v26, 4 }
 0x14e   : > { %5764 = vst [vmem:[#allocation54_spill] sm:$0xff] %v4238_v24  ;;  %v4264_v41 = vsel %vm341_vm0, %v885_v9, %v3694_v47  ;;  %v4268_v51 = vsel %vm341_vm0, %v889_v8, %v3700_v49  ;;  %v980_v63 = vperm.slane %v3950_v25, %v3341_v61  ;;  %v1251_v26 = vadd.f32 %v4238_v24, %v4233_v34  ;;  %v5840_v34 = vld [vmem:[#allocation45_spill] sm:$0xff] }
 0x14f   : > { %v4260_v2 = vsel %vm341_vm0, %v760_v32, %v5766_v18  ;;  %5768 = vst [vmem:[#allocation56_spill] sm:$0xff] %v4264_v41  ;;  %v5770_v35 = vrot.slane %v3690_v48, 4  ;;  %v984_v9 = vperm.slane %v976_v59, %v3341_v61  ;;  %v5771_v8 = vrot.slane %v3694_v47, 4  ;;  %v5776_v47 = vld [vmem:[#allocation13_spill] sm:$0xff] }
 0x150   : > { %5767 = vst [vmem:[#allocation55_spill] sm:$0xff] %v4260_v2  ;;  %v1250_v42 = vadd.f32 %v4260_v2, %v4229_v6  ;;  %v5773_v46 = vrot.slane %v3700_v49, 4  ;;  %v1092_v48 = vperm.slane %v1086_v31, %v3341_v61  ;;  %v4307_v49 = vmul.f32 0.5, %v1246_v20 }
 0x151   : > { %5769 = vst [vmem:[#allocation57_spill] sm:$0xff] %v4268_v51  ;;  %v4279_v32 = vsel %vm341_vm0, %v756_v33, %v5770_v35  ;;  %v4287_v25 = vsel %vm341_vm0, %v868_v54, %v5771_v8  ;;  %v4301_v35 = vsel %vm341_vm0, %v785_v36, %v3591_v50  ;;  %v4305_v54 = vsel %vm341_vm0, %v897_v28, %v5776_v47  ;;  %v5842_v6 = vld [vmem:[#allocation50_spill] sm:$0xff] }
 0x152   : > { %v1249_v16 = vadd.f32 %v4279_v32, %v4253_v4  ;;  %5772 = vst [vmem:[#allocation58_spill] sm:$0xff] %v4287_v25  ;;  %v4292_v18 = vsel %vm341_vm0, %v872_v29, %v5773_v46  ;;  %v1253_v33 = vadd.f32 %v4287_v25, %v4264_v41  ;;  %v5779_v29 = vrot.slane %v3591_v50, 4  ;;  %1415 = vrot.lane.b32.xlu2 %v4307_v49, %s3090_s26 }
 0x153   : > { %5774 = vst [vmem:[#allocation59_spill] sm:$0xff] %v4292_v18  ;;  %v1254_v59 = vadd.f32 %v4292_v18, %v4268_v51  ;;  %v997_v8 = vrot.slane %v980_v63, 4  ;;  %v893_v46 = vrot.slane %v4134_v55, 4  ;;  %v4316_v30 = vmul.f32 0.5, %v1250_v42  ;;  %v5792_v18 = vld [vmem:[#allocation16_spill] sm:$0xff] }
 0x154   : > { %5775 = vst [vmem:[#allocation60_spill] sm:$0xff] %v4301_v35  ;;  %v4313_v31 = vsel %vm341_vm0, %v4127_v38, %v5779_v29  ;;  %v4318_v57 = vmul.f32 0.5, %v1251_v26  ;;  %v5782_v36 = vrot.slane %v5776_v47, 4  ;;  %v1001_v20 = vrot.slane %v984_v9, 4  ;;  %v5784_v29 = vld [vmem:[#allocation12_spill] sm:$0xff] }
 0x155   : > { %5777 = vst [vmem:[#allocation13_spill] sm:$0xff] %v4305_v54  ;;  %v4328_v50 = vmul.f32 0.5, %v1249_v16  ;;  %v1252_v38 = vadd.f32 %v4313_v31, %v4301_v35  ;;  %v1109_v26 = vrot.slane %v1092_v48, 4  ;;  %1423 = vrot.lane.b32.xlu0 %v4316_v30, %s3090_s26  ;;  %v4340_v47 = vmul.f32 0.5, %v1254_v59 }
 0x156   : > { %5778 = vst [vmem:[#allocation61_spill] sm:$0xff] %v4307_v49  ;;  %v4324_v28 = vsel %vm341_vm0, %v4082_v62, %v5782_v36  ;;  %1425 = vrot.lane.b32.xlu1 %v4318_v57, %s3090_s26  ;;  %v4338_v62 = vmul.f32 0.5, %v1253_v33  ;;  %v5785_v16 = vrot.slane %v5784_v29, 4  ;;  %v1229_v49 = vrot.slane %v4201_v17, 4 }
 0x157   : > { %5780 = vst [vmem:[#allocation62_spill] sm:$0xff] %v4316_v30  ;;  %v1256_v42 = vadd.f32 %v4324_v28, %v4305_v54  ;;  %v5788_v30 = vrot.slane %v5786_v37, 4  ;;  %v4360_v33 = vsel %vm341_vm0, %v893_v46, %v5784_v29  ;;  %v1009_v59 = vrot.slane %v3968_v3, 4  ;;  %v5790_v54 = vld [vmem:[#allocation23_spill] sm:$0xff] }
 0x158   : > { %5781 = vst [vmem:[#allocation63_spill] sm:$0xff] %v4318_v57  ;;  %v4346_v36 = vsel %vm341_vm0, %v4134_v55, %v5785_v16  ;;  %v4365_v55 = vsel %vm341_vm0, %v1001_v20, %v5790_v54  ;;  %v1096_v16 = vperm.slane %v1088_v0, %v3341_v61  ;;  %v5796_v20 = vrot.slane %v5790_v54, 4 }
 0x159   : > { %5783 = vst [vmem:[#allocation64_spill] sm:$0xff] %v4324_v28  ;;  %v4351_v28 = vsel %vm341_vm0, %v997_v8, %v5786_v37  ;;  %v4356_v57 = vsel %vm341_vm0, %v980_v63, %v5788_v30  ;;  %v5791_v8 = vrot.slane %v4143_v1, 4  ;;  %v4374_v30 = vsel %vm341_vm0, %v1121_v40, %v5792_v18  ;;  %v5793_v63 = vld [vmem:[#allocation25_spill] sm:$0xff]  ;;  %v5794_v1 = vld [vmem:[#allocation14_spill] sm:$0xff] }
 0x15a   : > { %5787 = vst [vmem:[#allocation12_spill] sm:$0xff] %v4351_v28  ;;  %v4378_v46 = vsel %vm341_vm0, %v1109_v26, %v5793_v63  ;;  %v1257_v29 = vadd.f32 %v4356_v57, %v4351_v28  ;;  %v4401_v0 = vsel %vm341_vm0, %v984_v9, %v5796_v20  ;;  %v1208_v56 = vperm.slane %v4193_v21, %v3341_v61 }
 0x15b   : > { %5789 = vst [vmem:[#allocation22_spill] sm:$0xff] %v4356_v57  ;;  %v1198_v37 = vsel %vm341_vm0, %v5791_v8, %v3800_v43  ;;  %v4388_v43 = vsel %vm341_vm0, %v1229_v49, %v5794_v1  ;;  %v5797_v40 = vrot.slane %v5793_v63, 4  ;;  %v5798_v8 = vrot.slane %v5792_v18, 4  ;;  %1421 = vrot.lane.b32.xlu2 %v4328_v50, %s3090_s26 }
 0x15c   : > { %5795 = vst [vmem:[#allocation23_spill] sm:$0xff] %v4388_v43  ;;  %v1204_v49 = vperm.slane %v1198_v37, %v3341_v61  ;;  %v5799_v54 = vrot.slane %v5794_v1, 4  ;;  %v5803_v18 = vrot.slane %v3925_v19, 4  ;;  %v1225_v21 = vrot.slane %v1208_v56, 4  ;;  %v5807_v1 = vld [vmem:[#allocation17_spill] sm:$0xff] }
 0x15d   : > { %v4409_v26 = vsel %vm341_vm0, %v1092_v48, %v5797_v40  ;;  %v4415_v35 = vsel %vm341_vm0, %v4198_v60, %v5798_v8  ;;  %1429 = vrot.lane.b32.xlu0 %v4338_v62, %s3090_s26  ;;  %v4447_v40 = vmul.f32 0.5, %v1256_v42  ;;  %v1113_v8 = vrot.slane %v1096_v16, 4  ;;  %v5802_v60 = vld [vmem:[#allocation21_spill] sm:$0xff] }
 0x15e   : > { %v4421_v9 = vsel %vm341_vm0, %v4201_v17, %v5799_v54  ;;  %1431 = vrot.lane.b32.xlu1 %v4340_v47, %s3090_s26  ;;  %v4439_v17 = vmul.f32 0.5, %v1252_v38  ;;  %v1117_v54 = vrot.slane %v4214_v15, 4  ;;  %v1221_v48 = vrot.slane %v1204_v49, 4  ;;  %v5845_v13 = vld [vmem:[#allocation61_spill] sm:$0xff] }
 0x15f   : > { %5800 = vst [vmem:[#allocation16_spill] sm:$0xff] %v4421_v9  ;;  %v4454_v38 = vsel %vm341_vm0, %v5803_v18, %v5802_v60  ;;  %v5805_v63 = vrot.slane %v5802_v60, 4  ;;  %v4466_v61 = vsel %vm341_vm0, %v1009_v59, %v5807_v1  ;;  %v5809_v12 = vrot.slane %v5807_v1, 4  ;;  %v5820_v59 = vld [vmem:[#allocation19_spill] sm:$0xff] }
 0x160   : > { %5804 = vst [vmem:[#allocation25_spill] sm:$0xff] %v4454_v38  ;;  %v5812_v60 = vrot.slane %v5811_v53, 4  ;;  %v4481_v14 = vmul.f32 0.5, %v1257_v29  ;;  %v4505_v1 = vsel %vm341_vm0, %v1221_v48, %v5820_v59  ;;  %v1255_v25 = vadd.f32 %v4346_v36, %v4360_v33  ;;  %v5839_v48 = vld [vmem:[#allocation39_spill] sm:$0xff] }
 0x161   : > { %v4460_v20 = vsel %vm341_vm0, %v3925_v19, %v5805_v63  ;;  %5808 = vst [vmem:[#allocation21_spill] sm:$0xff] %v4466_v61  ;;  %v4472_v18 = vsel %vm341_vm0, %v3968_v3, %v5809_v12  ;;  %v4491_v12 = vsel %vm341_vm0, %v1113_v8, %v5811_v53  ;;  %v5822_v3 = vrot.slane %v5820_v59, 4  ;;  %v5824_v53 = vld [vmem:[#allocation20_spill] sm:$0xff]  ;;  %v5844_v19 = vld [vmem:[#allocation38_spill] sm:$0xff] }
 0x162   : > { %5806 = vst [vmem:[#allocation14_spill] sm:$0xff] %v4460_v20  ;;  %v4477_v27 = vsel %vm341_vm0, %v1096_v16, %v5812_v60  ;;  %v5816_v16 = vld [vmem:[#allocation18_spill] sm:$0xff]  ;;  %v4514_v8 = vsel %vm341_vm0, %v1225_v21, %v5824_v53  ;;  %v1261_v21 = vadd.f32 %v4409_v26, %v4378_v46 }
 0x163   : > { %5810 = vst [vmem:[#allocation17_spill] sm:$0xff] %v4472_v18  ;;  %v4495_v60 = vsel %vm341_vm0, %v1117_v54, %v5816_v16  ;;  %v5818_v29 = vrot.slane %v5816_v16, 4  ;;  %v4510_v42 = vsel %vm341_vm0, %v1204_v49, %v5822_v3  ;;  %v5826_v54 = vld [vmem:[#allocation15_spill] sm:$0xff]  ;;  %v5827_v16 = vrot.slane %v4150_v44, 4  ;;  %1427 = vrot.lane.b32.xlu2 %v4439_v17, %s3090_s26 }
 0x164   : > { %5813 = vst [vmem:[#allocation24_spill] sm:$0xff] %v4477_v27  ;;  %v1260_v49 = vadd.f32 %v4472_v18, %v4466_v61  ;;  %v5838_v61 = vld [vmem:[#allocation34_spill] sm:$0xff] }
 0x165   : > { %5815 = vst [vmem:[#allocation65_spill] sm:$0xff] %v4491_v12  ;;  %v4501_v63 = vsel %vm341_vm0, %v4214_v15, %v5818_v29  ;;  %v4520_v41 = vsel %vm341_vm0, %v5827_v16, %v5826_v54  ;;  %1435 = vrot.lane.b32.xlu0 %v4447_v40, %s3090_s26  ;;  %v1235_v16 = vrot.slane %v5826_v54, 4  ;;  %v5832_v29 = vrot.slane %v5824_v53, 4 }
 0x166   : > { %5817 = vst [vmem:[#allocation18_spill] sm:$0xff] %v4495_v60  ;;  %1437 = vrot.lane.b32.xlu1 %v4481_v14, %s3090_s26  ;;  %v1259_v54 = vadd.f32 %v4460_v20, %v4454_v38  ;;  %v4564_v53 = vmul.f32 0.5, %v1255_v25  ;;  %v1262_v25 = vadd.f32 %v4477_v27, %v4491_v12 }
 0x167   : > { %5819 = vst [vmem:[#allocation66_spill] sm:$0xff] %v4501_v63  ;;  %v4550_v28 = vsel %vm341_vm0, %v1208_v56, %v5832_v29  ;;  %v4558_v3 = vsel %vm341_vm0, %v4150_v44, %v1235_v16  ;;  %v4568_v29 = vmul.f32 0.5, %v1260_v49  ;;  %v1258_v44 = vadd.f32 %v4401_v0, %v4365_v55 }
 0x168   : > { %5821 = vst [vmem:[#allocation19_spill] sm:$0xff] %v4505_v1  ;;  %v4566_v56 = vmul.f32 0.5, %v1259_v54  ;;  %v1263_v16 = vadd.f32 %v4501_v63, %v4495_v60  ;;  %v4584_v54 = vmul.f32 0.5, %v1262_v25  ;;  %v1266_v25 = vadd.f32 %v4550_v28, %v4514_v8 }
 0x169   : > { %5823 = vst [vmem:[#allocation67_spill] sm:$0xff] %v4510_v42  ;;  %v4582_v49 = vmul.f32 0.5, %v1258_v44  ;;  %v1265_v44 = vadd.f32 %v4510_v42, %v4505_v1  ;;  %v4603_v60 = vmul.f32 0.5, %v1261_v21  ;;  %v1268_v21 = vadd.f32 %v4558_v3, %v4520_v41 }
 0x16a   : > { %5825 = vst [vmem:[#allocation20_spill] sm:$0xff] %v4514_v8  ;;  %v4586_v57 = vmul.f32 0.5, %v1263_v16  ;;  %v5639_v16 = vmov 0   ;;  %v4607_v12 = vmul.f32 0.5, %v1266_v25  ;;  %v1264_v8 = vadd.f32 %v4415_v35, %v4374_v30 }
 0x16b   : > { %5828 = vst [vmem:[#allocation15_spill] sm:$0xff] %v4520_v41  ;;  %1433 = vrot.lane.b32.xlu2 %v4564_v53, %s3090_s26  ;;  %2983 = vset.pattern.permute.xlu1 %v5639_v16  ;;  %v4605_v63 = vmul.f32 0.5, %v1265_v44  ;;  %v4621_v44 = vmul.f32 0.5, %v1268_v21  ;;  %v1267_v25 = vadd.f32 %v4421_v9, %v4388_v43  ;;  %v5836_v41 = vld [vmem:[#allocation44_spill] sm:$0xff] }
 0x16c   : > { %5833 = vst [vmem:[#allocation68_spill] sm:$0xff] %v4550_v28  ;;  %2985 = vset.pattern.permute.xlu0 %v5639_v16  ;;  %2984 = vset.pattern.permute.xlu2 %v5639_v16  ;;  %v4619_v16 = vmul.f32 0.5, %v1264_v8 }
 0x16d   : > { %5834 = vst [vmem:[#allocation69_spill] sm:$0xff] %v4558_v3  ;;  %1441 = vrot.lane.b32.xlu0 %v4566_v56, %s3090_s26  ;;  %v4629_v28 = vmul.f32 0.5, %v1267_v25  ;;  %v5837_v3 = vld [vmem:[#allocation48_spill] sm:$0xff] }
 0x16e   : > { %5835 = vst [vmem:[#allocation70_spill] sm:$0xff] %v4568_v29  ;;  %1443 = vrot.lane.b32.xlu1 %v4568_v29, %s3090_s26 }
 0x173   : > { %1439 = vrot.lane.b32.xlu2 %v4582_v49, %s3090_s26 }
 0x175   : > { %1447 = vrot.lane.b32.xlu0 %v4584_v54, %s3090_s26 }
 0x176   : > { %1449 = vrot.lane.b32.xlu1 %v4586_v57, %s3090_s26 }
 0x17b   : > { %1445 = vrot.lane.b32.xlu2 %v4603_v60, %s3090_s26 }
 0x17d   : > { %1453 = vrot.lane.b32.xlu0 %v4605_v63, %s3090_s26 }
 0x17e   : > { %1455 = vrot.lane.b32.xlu1 %v4607_v12, %s3090_s26 }
 0x183   : > { %1451 = vrot.lane.b32.xlu2 %v4619_v16, %s3090_s26 }
 0x185   : > { %1459 = vrot.lane.b32.xlu0 %v4621_v44, %s3090_s26 }
 0x18b   : > { %1457 = vrot.lane.b32.xlu2 %v4629_v28, %s3090_s26 }
 0x193   : > { %v1398_v1 = vpop.permute.xlu2 %1397 }
 0x194   : > { %v1493_v8 = vadd.f32 %v1398_v1, %v5836_v41  ;;  %v5841_v1 = vld [vmem:[#allocation46_spill] sm:$0xff] }
 0x196   : > { %1558 = vperm.xlu1 %2983, %v1493_v8  }
 0x19c   : > { %v1404_v21 = vpop.permute.xlu2 %1403 }
 0x19d   : > { %v1496_v42 = vadd.f32 %v1404_v21, %v5837_v3  ;;  %v1400_v27 = vpop.permute.xlu0 %1399 }
 0x19e   : > { %v1494_v18 = vadd.f32 %v1400_v27, %v5838_v61 }
 0x19f   : > { %1567 = vperm.xlu1 %2983, %v1496_v42  }
 0x1a0   : > { %1561 = vperm.xlu2 %2984, %v1494_v18   ;;  %v5843_v18 = vld [vmem:[#allocation49_spill] sm:$0xff] }
 0x1a2   : > { %v1402_v20 = vpop.permute.xlu1 %1401 }
 0x1a3   : > { %v1495_v25 = vadd.f32 %v1402_v20, %v5839_v48 }
 0x1a4   : > { %v1410_v38 = vpop.permute.xlu2 %1409 }
 0x1a5   : > { %1564 = vperm.xlu0 %2985, %v1495_v25   ;;  %v1499_v2 = vadd.f32 %v1410_v38, %v5842_v6 }
 0x1ab   : > { %v1406_v51 = vpop.permute.xlu0 %1405 }
 0x1ac   : > { %v1416_v59 = vpop.permute.xlu2 %1415  ;;  %v1408_v15 = vpop.permute.xlu1 %1407  ;;  %v1497_v24 = vadd.f32 %v1406_v51, %v5840_v34 }
 0x1ad   : > { %v1498_v8 = vadd.f32 %v1408_v15, %v5841_v1  ;;  %v1502_v51 = vadd.f32 %v1416_v59, %v5845_v13 }
 0x1ae   : > { %1570 = vperm.xlu2 %2984, %v1497_v24   ;;  %v5847_v24 = vld [vmem:[#allocation51_spill] sm:$0xff] }
 0x1af   : > { %1573 = vperm.xlu1 %2983, %v1498_v8  }
 0x1b4   : > { %v1414_v42 = vpop.permute.xlu1 %1413 }
 0x1b5   : > { %v1412_v21 = vpop.permute.xlu0 %1411  ;;  %v1422_v27 = vpop.permute.xlu2 %1421  ;;  %v1501_v39 = vadd.f32 %v1414_v42, %v5844_v19  ;;  %v5848_v42 = vld [vmem:[#allocation62_spill] sm:$0xff] }
 0x1b6   : > { %v1500_v5 = vadd.f32 %v1412_v21, %v5843_v18  ;;  %1576 = vperm.xlu2 %2984, %v1499_v2   ;;  %v1505_v21 = vadd.f32 %v1422_v27, %v4328_v50 }
 0x1b7   : > { %1582 = vperm.xlu1 %2983, %v1501_v39  }
 0x1b8   : > { %1579 = vperm.xlu0 %2985, %v1500_v5   ;;  %v5849_v5 = vld [vmem:[#allocation63_spill] sm:$0xff] }
 0x1bd   : > { %v1418_v20 = vpop.permute.xlu0 %1417  ;;  %v1420_v25 = vpop.permute.xlu1 %1419 }
 0x1be   : > { %v1503_v15 = vadd.f32 %v1418_v20, %v5846_v10  ;;  %v1504_v8 = vadd.f32 %v1420_v25, %v5847_v24  ;;  %v1428_v37 = vpop.permute.xlu2 %1427  ;;  %1585 = vperm.xlu2 %2984, %v1502_v51  }
 0x1bf   : > { %v1508_v25 = vadd.f32 %v1428_v37, %v4439_v17 }
 0x1c0   : > { %1588 = vperm.xlu0 %2985, %v1503_v15   ;;  %1591 = vperm.xlu1 %2983, %v1504_v8  }
 0x1c6   : > { %1594 = vperm.xlu2 %2984, %v1505_v21   ;;  %v1434_v59 = vpop.permute.xlu2 %1433 }
 0x1c7   : > { %v1424_v38 = vpop.permute.xlu0 %1423 }
 0x1c8   : > { %v1426_v43 = vpop.permute.xlu1 %1425  ;;  %v1506_v2 = vadd.f32 %v1424_v38, %v5848_v42 }
 0x1c9   : > { %v1507_v39 = vadd.f32 %v1426_v43, %v5849_v5  ;;  %v1511_v43 = vadd.f32 %v1434_v59, %v4564_v53 }
 0x1ca   : > { %1597 = vperm.xlu0 %2985, %v1506_v2  }
 0x1cb   : > { %1600 = vperm.xlu1 %2983, %v1507_v39  }
 0x1ce   : > { %1603 = vperm.xlu2 %2984, %v1508_v25   ;;  %v1440_v27 = vpop.permute.xlu2 %1439 }
 0x1cf   : > { %v1430_v9 = vpop.permute.xlu0 %1429 }
 0x1d0   : > { %v1432_v20 = vpop.permute.xlu1 %1431  ;;  %v1509_v51 = vadd.f32 %v1430_v9, %v4338_v62  ;;  %v1514_v9 = vadd.f32 %v1440_v27, %v4582_v49 }
 0x1d1   : > { %v1510_v15 = vadd.f32 %v1432_v20, %v4340_v47 }
 0x1d2   : > { %1606 = vperm.xlu0 %2985, %v1509_v51  }
 0x1d3   : > { %1609 = vperm.xlu1 %2983, %v1510_v15  }
 0x1d6   : > { %1612 = vperm.xlu2 %2984, %v1511_v43   ;;  %v1446_v51 = vpop.permute.xlu2 %1445 }
 0x1d7   : > { %v1436_v8 = vpop.permute.xlu0 %1435 }
 0x1d8   : > { %v1438_v38 = vpop.permute.xlu1 %1437  ;;  %v1512_v21 = vadd.f32 %v1436_v8, %v4447_v40  ;;  %v1517_v8 = vadd.f32 %v1446_v51, %v4603_v60 }
 0x1d9   : > { %v1513_v2 = vadd.f32 %v1438_v38, %v4481_v14 }
 0x1da   : > { %1615 = vperm.xlu0 %2985, %v1512_v21  }
 0x1db   : > { %1618 = vperm.xlu1 %2983, %v1513_v2  }
 0x1de   : > { %1621 = vperm.xlu2 %2984, %v1514_v9   ;;  %v1452_v21 = vpop.permute.xlu2 %1451 }
 0x1df   : > { %v1442_v37 = vpop.permute.xlu0 %1441 }
 0x1e0   : > { %v1444_v39 = vpop.permute.xlu1 %1443  ;;  %v1515_v20 = vadd.f32 %v1442_v37, %v4566_v56  ;;  %v1520_v37 = vadd.f32 %v1452_v21, %v4619_v16  ;;  %v1653_v21 = vlaneseq }
 0x1e1   : > { %v1516_v25 = vadd.f32 %v1444_v39, %v4568_v29 }
 0x1e2   : > { %1624 = vperm.xlu0 %2985, %v1515_v20  }
 0x1e3   : > { %1627 = vperm.xlu1 %2983, %v1516_v25  }
 0x1e6   : > { %1630 = vperm.xlu2 %2984, %v1517_v8   ;;  %v1458_v20 = vpop.permute.xlu2 %1457 }
 0x1e7   : > { %v1448_v59 = vpop.permute.xlu0 %1447  ;;  %v1523_v51 = vadd.f32 %v1458_v20, %v4629_v28 }
 0x1e8   : > { %v1450_v15 = vpop.permute.xlu1 %1449  ;;  %v1518_v38 = vadd.f32 %v1448_v59, %v4584_v54 }
 0x1e9   : > { %v1519_v43 = vadd.f32 %v1450_v15, %v4586_v57 }
 0x1ea   : > { %1633 = vperm.xlu0 %2985, %v1518_v38  }
 0x1eb   : > { %1636 = vperm.xlu1 %2983, %v1519_v43  }
 0x1ee   : > { %1639 = vperm.xlu2 %2984, %v1520_v37   ;;  %v4691_v37 = vand.u32 127, %v1653_v21 }
 0x1ef   : > { %v1454_v27 = vpop.permute.xlu0 %1453 }
 0x1f0   : > { %v1456_v2 = vpop.permute.xlu1 %1455  ;;  %v1521_v39 = vadd.f32 %v1454_v27, %v4605_v63 }
 0x1f1   : > { %v1522_v9 = vadd.f32 %v1456_v2, %v4607_v12 }
 0x1f2   : > { %1642 = vperm.xlu0 %2985, %v1521_v39  }
 0x1f3   : > { %1645 = vperm.xlu1 %2983, %v1522_v9  }
 0x1f6   : > { %1648 = vperm.xlu2 %2984, %v1523_v51  }
 0x1f7   : > { %v1460_v25 = vpop.permute.xlu0 %1459 }
 0x1f8   : > { %v1524_v59 = vadd.f32 %v1460_v25, %v4621_v44 }
 0x1fa   : > { %1651 = vperm.xlu0 %2985, %v1524_v59   ;;  %v1562_v15 = vpop.permute.xlu2 %1561 }
 0x1fb   : > { %1731 = vrot.lane.b32.xlu1 %v5836_v41, %s3092_s27  ;;  %v1656_v25 = vperm.slane %v1562_v15, %v4691_v37 }
 0x1fe   : > { %1733 = vrot.lane.b32.xlu2 %v5838_v61, %s3092_s27 }
 0x202   : > { %1735 = vrot.lane.b32.xlu0 %v5839_v48, %s3092_s27 }
 0x203   : > { %1737 = vrot.lane.b32.xlu1 %v5837_v3, %s3092_s27 }
 0x206   : > { %1739 = vrot.lane.b32.xlu2 %v5840_v34, %s3092_s27 }
 0x208   : > { %v1571_v8 = vpop.permute.xlu2 %1570  ;;  %v1559_v38 = vpop.permute.xlu1 %1558 }
 0x209   : > { %v1655_v9 = vperm.slane %v1559_v38, %v4691_v37 }
 0x20a   : > { %1741 = vrot.lane.b32.xlu0 %v5841_v1, %s3092_s27 }
 0x20b   : > { %1743 = vrot.lane.b32.xlu1 %v5842_v6, %s3092_s27  ;;  %v1688_v51 = vsel %vm1687_vm1, %v1656_v25, %v1655_v9 }
 0x20e   : > { %1745 = vrot.lane.b32.xlu2 %v5843_v18, %s3092_s27 }
 0x210   : > { %v1577_v43 = vpop.permute.xlu2 %1576 }
 0x211   : > { %v1568_v27 = vpop.permute.xlu1 %1567 }
 0x212   : > { %1747 = vrot.lane.b32.xlu0 %v5844_v19, %s3092_s27  ;;  %v1658_v15 = vperm.slane %v1568_v27, %v4691_v37  ;;  %v1661_v27 = vperm.slane %v1577_v43, %v4691_v37 }
 0x213   : > { %1749 = vrot.lane.b32.xlu1 %v5845_v13, %s3092_s27 }
 0x216   : > { %1751 = vrot.lane.b32.xlu2 %v5846_v10, %s3092_s27 }
 0x217   : > { %v1565_v39 = vpop.permute.xlu0 %1564 }
 0x218   : > { %v1586_v2 = vpop.permute.xlu2 %1585  ;;  %v1657_v20 = vperm.slane %v1565_v39, %v4691_v37 }
 0x21a   : > { %1753 = vrot.lane.b32.xlu0 %v5847_v24, %s3092_s27  ;;  %v1690_v59 = vsel %vm1689_vm2, %v1657_v20, %v1688_v51 }
 0x21b   : > { %1755 = vrot.lane.b32.xlu1 %v4328_v50, %s3092_s27  ;;  %v1692_v39 = vsel %vm1691_vm3, %v1658_v15, %v1690_v59 }
 0x21e   : > { %1757 = vrot.lane.b32.xlu2 %v5848_v42, %s3092_s27 }
 0x220   : > { %v1595_v38 = vpop.permute.xlu2 %1594 }
 0x221   : > { %v1574_v21 = vpop.permute.xlu1 %1573 }
 0x222   : > { %1759 = vrot.lane.b32.xlu0 %v5849_v5, %s3092_s27  ;;  %v1660_v24 = vperm.slane %v1574_v21, %v4691_v37  ;;  %v1659_v5 = vperm.slane %v1571_v8, %v4691_v37 }
 0x223   : > { %1761 = vrot.lane.b32.xlu1 %v4439_v17, %s3092_s27 }
 0x224   : > { %v1694_v9 = vsel %vm1693_vm4, %v1659_v5, %v1692_v39  ;;  %v1664_v39 = vperm.slane %v1586_v2, %v4691_v37  ;;  %v1667_v2 = vperm.slane %v1595_v38, %v4691_v37 }
 0x225   : > { %v1696_v20 = vsel %vm1695_vm5, %v1660_v24, %v1694_v9 }
 0x226   : > { %1763 = vrot.lane.b32.xlu2 %v4338_v62, %s3092_s27  ;;  %v1698_v59 = vsel %vm1697_vm6, %v1661_v27, %v1696_v20 }
 0x228   : > { %v1604_v25 = vpop.permute.xlu2 %1603 }
 0x229   : > { %v1583_v51 = vpop.permute.xlu1 %1582 }
 0x22a   : > { %1765 = vrot.lane.b32.xlu0 %v4340_v47, %s3092_s27  ;;  %v1580_v8 = vpop.permute.xlu0 %1579  ;;  %v1663_v24 = vperm.slane %v1583_v51, %v4691_v37 }
 0x22b   : > { %1767 = vrot.lane.b32.xlu1 %v4564_v53, %s3092_s27  ;;  %v1662_v5 = vperm.slane %v1580_v8, %v4691_v37 }
 0x22c   : > { %v1701_v27 = vsel %vm1687_vm1, %v1664_v39, %v1663_v24 }
 0x22d   : > { %v1700_v21 = vsel %vm1699_vm7, %v1662_v5, %v1698_v59 }
 0x22e   : > { %1727 = vst.msk [vmem:[%s4721_s29] sm:$0xff] %vm1726_vm8, %v1700_v21  ;;  %1769 = vrot.lane.b32.xlu2 %v4447_v40, %s3092_s27 }
 0x230   : > { %v1613_v43 = vpop.permute.xlu2 %1612 }
 0x232   : > { %1771 = vrot.lane.b32.xlu0 %v4481_v14, %s3092_s27  ;;  %v1589_v15 = vpop.permute.xlu0 %1588  ;;  %v1592_v20 = vpop.permute.xlu1 %1591 }
 0x233   : > { %1773 = vrot.lane.b32.xlu1 %v4582_v49, %s3092_s27  ;;  %v1665_v9 = vperm.slane %v1589_v15, %v4691_v37  ;;  %v1666_v8 = vperm.slane %v1592_v20, %v4691_v37  ;;  %v1670_v20 = vperm.slane %v1604_v25, %v4691_v37 }
 0x235   : > { %v1702_v5 = vsel %vm1689_vm2, %v1665_v9, %v1701_v27 }
 0x236   : > { %1775 = vrot.lane.b32.xlu2 %v4566_v56, %s3092_s27  ;;  %v1703_v51 = vsel %vm1691_vm3, %v1666_v8, %v1702_v5 }
 0x237   : > { %v1704_v39 = vsel %vm1693_vm4, %v1667_v2, %v1703_v51 }
 0x238   : > { %v1622_v59 = vpop.permute.xlu2 %1621 }
 0x23a   : > { %1777 = vrot.lane.b32.xlu0 %v4568_v29, %s3092_s27  ;;  %v5665_v29 = vmov 1  }
 0x23b   : > { %1779 = vrot.lane.b32.xlu1 %v4603_v60, %s3092_s27  ;;  %2987 = vset.pattern.permute.xlu2 %v5665_v29 }
 0x23c   : > { %v1598_v21 = vpop.permute.xlu0 %1597  ;;  %2986 = vset.pattern.permute.xlu1 %v5665_v29 }
 0x23d   : > { %v1668_v24 = vperm.slane %v1598_v21, %v4691_v37  ;;  %v1601_v15 = vpop.permute.xlu1 %1600 }
 0x23e   : > { %v1669_v9 = vperm.slane %v1601_v15, %v4691_v37  ;;  %1781 = vrot.lane.b32.xlu2 %v4584_v54, %s3092_s27 }
 0x23f   : > { %v1705_v27 = vsel %vm1695_vm5, %v1668_v24, %v1704_v39 }
 0x240   : > { %v1706_v8 = vsel %vm1697_vm6, %v1669_v9, %v1705_v27  ;;  %v1631_v38 = vpop.permute.xlu2 %1630  ;;  %v1673_v9 = vperm.slane %v1613_v43, %v4691_v37 }
 0x241   : > { %v1707_v5 = vsel %vm1699_vm7, %v1670_v20, %v1706_v8 }
 0x242   : > { %1728 = vst.msk [vmem:[%s4721_s29 + $0x8] sm:$0xff] %vm1726_vm8, %v1707_v5  ;;  %1783 = vrot.lane.b32.xlu0 %v4586_v57, %s3092_s27 }
 0x243   : > { %1785 = vrot.lane.b32.xlu1 %v4619_v16, %s3092_s27 }
 0x244   : > { %v1607_v25 = vpop.permute.xlu0 %1606 }
 0x245   : > { %v1610_v51 = vpop.permute.xlu1 %1609  ;;  %v1671_v2 = vperm.slane %v1607_v25, %v4691_v37 }
 0x246   : > { %v1672_v21 = vperm.slane %v1610_v51, %v4691_v37  ;;  %1787 = vrot.lane.b32.xlu2 %v4605_v63, %s3092_s27  ;;  %v5850_v51 = vsub.f32 %v4038_v45, %v4033_v22 }
 0x248   : > { %v1708_v24 = vsel %vm1687_vm1, %v1672_v21, %v1671_v2  ;;  %v1640_v15 = vpop.permute.xlu2 %1639  ;;  %v4779_v29 = vmul.f32 0.5, %v5850_v51  ;;  %v1676_v2 = vperm.slane %v1622_v59, %v4691_v37 }
 0x249   : > { %v1709_v8 = vsel %vm1689_vm2, %v1673_v9, %v1708_v24 }
 0x24a   : > { %1789 = vrot.lane.b32.xlu0 %v4607_v12, %s3092_s27 }
 0x24b   : > { %1791 = vrot.lane.b32.xlu1 %v4629_v28, %s3092_s27 }
 0x24c   : > { %v1616_v39 = vpop.permute.xlu0 %1615 }
 0x24d   : > { %v1674_v20 = vperm.slane %v1616_v39, %v4691_v37  ;;  %v1619_v27 = vpop.permute.xlu1 %1618 }
 0x24e   : > { %v1675_v5 = vperm.slane %v1619_v27, %v4691_v37  ;;  %1793 = vrot.lane.b32.xlu2 %v4621_v44, %s3092_s27 }
 0x24f   : > { %v1710_v25 = vsel %vm1691_vm3, %v1674_v20, %v1709_v8  ;;  %v5851_v8 = vsub.f32 %v4104_v52, %v4079_v23  ;;  %v5852_v23 = vld [vmem:[#allocation10_spill] sm:$0xff] }
 0x250   : > { %v1711_v43 = vsel %vm1693_vm4, %v1675_v5, %v1710_v25  ;;  %v1649_v21 = vpop.permute.xlu2 %1648  ;;  %v5853_v52 = vsub.f32 %v4178_v7, %v5852_v23 }
 0x251   : > { %v1712_v20 = vsel %vm1695_vm5, %v1676_v2, %v1711_v43  ;;  %v4795_v51 = vmul.f32 0.5, %v5851_v8 }
 0x252   : > { %2088 = vrot.lane.b32.xlu0 %v4779_v29, %s3090_s26 }
 0x254   : > { %v1625_v24 = vpop.permute.xlu0 %1624 }
 0x255   : > { %v1677_v39 = vperm.slane %v1625_v24, %v4691_v37  ;;  %v1628_v9 = vpop.permute.xlu1 %1627  ;;  %v1679_v24 = vperm.slane %v1631_v38, %v4691_v37 }
 0x256   : > { %v1678_v22 = vperm.slane %v1628_v9, %v4691_v37  ;;  %v4808_v9 = vmul.f32 0.5, %v5853_v52 }
 0x257   : > { %v1713_v45 = vsel %vm1697_vm6, %v1677_v39, %v1712_v20 }
 0x258   : > { %v1714_v27 = vsel %vm1699_vm7, %v1678_v22, %v1713_v45  ;;  %v1734_v59 = vpop.permute.xlu2 %1733  ;;  %v1682_v45 = vperm.slane %v1640_v15, %v4691_v37 }
 0x259   : > { %1729 = vst.msk [vmem:[%s4721_s29 + $0x10] sm:$0xff] %vm1726_vm8, %v1714_v27  ;;  %v1828_v25 = vsub.f32 %v5838_v61, %v1734_v59 }
 0x25a   : > { %2094 = vrot.lane.b32.xlu0 %v4795_v51, %s3090_s26 }
 0x25b   : > { %1895 = vperm.xlu1 %2986, %v1828_v25   ;;  %v5854_v25 = vsub.f32 %v4223_v58, %v4208_v11  ;;  %v5855_v11 = vsub.f32 %v4279_v32, %v4253_v4 }
 0x25c   : > { %v1634_v5 = vpop.permute.xlu0 %1633 }
 0x25d   : > { %v1680_v43 = vperm.slane %v1634_v5, %v4691_v37  ;;  %v1637_v2 = vpop.permute.xlu1 %1636  ;;  %v4838_v58 = vmul.f32 0.5, %v5855_v11 }
 0x25e   : > { %v1681_v39 = vperm.slane %v1637_v2, %v4691_v37  ;;  %v1685_v2 = vperm.slane %v1649_v21, %v4691_v37 }
 0x25f   : > { %v1715_v20 = vsel %vm1687_vm1, %v1680_v43, %v1679_v24  ;;  %v4822_v43 = vmul.f32 0.5, %v5854_v25 }
 0x260   : > { %v1716_v61 = vsel %vm1689_vm2, %v1681_v39, %v1715_v20  ;;  %v1740_v59 = vpop.permute.xlu2 %1739 }
 0x261   : > { %v1717_v8 = vsel %vm1691_vm3, %v1682_v45, %v1716_v61  ;;  %v1831_v32 = vsub.f32 %v5840_v34, %v1740_v59 }
 0x262   : > { %2100 = vrot.lane.b32.xlu0 %v4808_v9, %s3090_s26 }
 0x264   : > { %v1643_v22 = vpop.permute.xlu0 %1642 }
 0x265   : > { %v1683_v38 = vperm.slane %v1643_v22, %v4691_v37  ;;  %v1646_v27 = vpop.permute.xlu1 %1645 }
 0x266   : > { %v1684_v7 = vperm.slane %v1646_v27, %v4691_v37  ;;  %v5856_v27 = vld [vmem:[#allocation60_spill] sm:$0xff] }
 0x267   : > { %v1718_v5 = vsel %vm1693_vm4, %v1683_v38, %v1717_v8  ;;  %v5857_v8 = vsub.f32 %v4313_v31, %v5856_v27 }
 0x268   : > { %v1719_v15 = vsel %vm1695_vm5, %v1684_v7, %v1718_v5  ;;  %v1746_v61 = vpop.permute.xlu2 %1745 }
 0x269   : > { %v1720_v52 = vsel %vm1697_vm6, %v1685_v2, %v1719_v15  ;;  %v4847_v7 = vmul.f32 0.5, %v5857_v8  ;;  %v1834_v31 = vsub.f32 %v5843_v18, %v1746_v61 }
 0x26a   : > { %2106 = vrot.lane.b32.xlu0 %v4822_v43, %s3090_s26 }
 0x26c   : > { %v1652_v24 = vpop.permute.xlu0 %1651 }
 0x26d   : > { %v1686_v39 = vperm.slane %v1652_v24, %v4691_v37  ;;  %v4829_v23 = vpop.permute.xlu1 %1731 }
 0x26f   : > { %v1721_v20 = vsel %vm1699_vm7, %v1686_v39, %v1720_v52 }
 0x270   : > { %1730 = vst.msk [vmem:[%s4721_s29 + $0x18] sm:$0xff] %vm1726_vm8, %v1721_v20  ;;  %v1752_v4 = vpop.permute.xlu2 %1751 }
 0x272   : > { %2112 = vrot.lane.b32.xlu0 %v4838_v58, %s3090_s26 }
 0x274   : > { %v1736_v21 = vpop.permute.xlu0 %1735 }
 0x275   : > { %v1829_v22 = vsub.f32 %v5839_v48, %v1736_v21  ;;  %v1738_v45 = vpop.permute.xlu1 %1737  ;;  %v5858_v48 = vsub.f32 %v4346_v36, %v4360_v33  ;;  %v1837_v36 = vsub.f32 %v5846_v10, %v1752_v4  ;;  %v5861_v10 = vsub.f32 %v4415_v35, %v4374_v30 }
 0x276   : > { %v1830_v38 = vsub.f32 %v5837_v3, %v1738_v45 }
 0x277   : > { %1898 = vperm.xlu2 %2987, %v1829_v22   ;;  %v4856_v3 = vmul.f32 0.5, %v5858_v48 }
 0x278   : > { %1901 = vperm.xlu1 %2986, %v1830_v38   ;;  %v1758_v2 = vpop.permute.xlu2 %1757 }
 0x27a   : > { %2118 = vrot.lane.b32.xlu0 %v4847_v7, %s3090_s26 }
 0x27d   : > { %v1744_v5 = vpop.permute.xlu1 %1743 }
 0x27e   : > { %v1833_v25 = vsub.f32 %v5842_v6, %v1744_v5  ;;  %v5859_v6 = vsub.f32 %v4401_v0, %v4365_v55  ;;  %v1840_v55 = vsub.f32 %v5848_v42, %v1758_v2  ;;  %v5862_v42 = vld [vmem:[#allocation16_spill] sm:$0xff] }
 0x27f   : > { %1904 = vperm.xlu2 %2987, %v1831_v32  }
 0x280   : > { %1910 = vperm.xlu1 %2986, %v1833_v25   ;;  %v4865_v34 = vmul.f32 0.5, %v5859_v6  ;;  %v1764_v18 = vpop.permute.xlu2 %1763  ;;  %v4903_v25 = vpop.permute.xlu0 %1741 }
 0x282   : > { %2124 = vrot.lane.b32.xlu0 %v4856_v3, %s3090_s26 }
 0x285   : > { %v1750_v15 = vpop.permute.xlu1 %1749 }
 0x286   : > { %v1836_v24 = vsub.f32 %v5845_v13, %v1750_v15  ;;  %v5860_v13 = vsub.f32 %v4409_v26, %v4378_v46  ;;  %v1843_v46 = vsub.f32 %v4338_v62, %v1764_v18 }
 0x287   : > { %1913 = vperm.xlu2 %2987, %v1834_v31   ;;  %v5865_v31 = vld [vmem:[#allocation31_spill] sm:$0xff] }
 0x288   : > { %1919 = vperm.xlu1 %2986, %v1836_v24   ;;  %v4874_v39 = vmul.f32 0.5, %v5860_v13  ;;  %v1770_v20 = vpop.permute.xlu2 %1769  ;;  %v5869_v24 = vld [vmem:[#allocation35_spill] sm:$0xff] }
 0x289   : > { %v1846_v30 = vsub.f32 %v4447_v40, %v1770_v20 }
 0x28a   : > { %2130 = vrot.lane.b32.xlu0 %v4865_v34, %s3090_s26 }
 0x28d   : > { %v1756_v33 = vpop.permute.xlu1 %1755 }
 0x28e   : > { %v1839_v59 = vsub.f32 %v4328_v50, %v1756_v33  ;;  %v4883_v50 = vmul.f32 0.5, %v5861_v10  ;;  %v5872_v33 = vld [vmem:[#allocation40_spill] sm:$0xff] }
 0x28f   : > { %1922 = vperm.xlu2 %2987, %v1837_v36  }
 0x290   : > { %1928 = vperm.xlu1 %2986, %v1839_v59   ;;  %v1776_v35 = vpop.permute.xlu2 %1775 }
 0x291   : > { %v1849_v62 = vsub.f32 %v4566_v56, %v1776_v35  ;;  %v5884_v35 = vld [vmem:[#allocation29_spill] sm:$0xff] }
 0x292   : > { %2136 = vrot.lane.b32.xlu0 %v4874_v39, %s3090_s26 }
 0x295   : > { %v1762_v0 = vpop.permute.xlu1 %1761 }
 0x296   : > { %v1842_v52 = vsub.f32 %v4439_v17, %v1762_v0  ;;  %v5863_v17 = vld [vmem:[#allocation23_spill] sm:$0xff] }
 0x297   : > { %1931 = vperm.xlu2 %2987, %v1840_v55   ;;  %v5864_v61 = vsub.f32 %v5862_v42, %v5863_v17  ;;  %v5876_v0 = vld [vmem:[#allocation43_spill] sm:$0xff] }
 0x298   : > { %1937 = vperm.xlu1 %2986, %v1842_v52   ;;  %v1782_v38 = vpop.permute.xlu2 %1781  ;;  %v5877_v52 = vld [vmem:[#allocation42_spill] sm:$0xff] }
 0x299   : > { %v4892_v21 = vmul.f32 0.5, %v5864_v61  ;;  %v1852_v8 = vsub.f32 %v4584_v54, %v1782_v38  ;;  %v5866_v54 = vld [vmem:[#allocation30_spill] sm:$0xff]  ;;  %v5878_v10 = vsub.f32 %v5876_v0, %v5877_v52  ;;  %v5883_v61 = vld [vmem:[#allocation28_spill] sm:$0xff] }
 0x29a   : > { %2142 = vrot.lane.b32.xlu0 %v4883_v50, %s3090_s26  ;;  %v5867_v15 = vsub.f32 %v5865_v31, %v5866_v54 }
 0x29b   : > { %v4939_v20 = vmul.f32 0.5, %v5878_v10 }
 0x29c   : > { %v4910_v2 = vmul.f32 0.5, %v5867_v15 }
 0x29d   : > { %v1768_v26 = vpop.permute.xlu1 %1767 }
 0x29e   : > { %v1845_v11 = vsub.f32 %v4564_v53, %v1768_v26  ;;  %v5880_v26 = vld [vmem:[#allocation11_spill] sm:$0xff] }
 0x29f   : > { %1940 = vperm.xlu2 %2987, %v1843_v46   ;;  %v5879_v46 = vld [vmem:[#allocation47_spill] sm:$0xff] }
 0x2a0   : > { %1946 = vperm.xlu1 %2986, %v1845_v11   ;;  %v1788_v40 = vpop.permute.xlu2 %1787  ;;  %v5881_v11 = vsub.f32 %v5879_v46, %v5880_v26 }
 0x2a2   : > { %2148 = vrot.lane.b32.xlu0 %v4892_v21, %s3090_s26  ;;  %v4944_v42 = vmul.f32 0.5, %v5881_v11  ;;  %v5904_v11 = vld [vmem:[#allocation59_spill] sm:$0xff] }
 0x2a5   : > { %v1774_v22 = vpop.permute.xlu1 %1773 }
 0x2a6   : > { %v1848_v45 = vsub.f32 %v4582_v49, %v1774_v22  ;;  %v1855_v49 = vsub.f32 %v4605_v63, %v1788_v40  ;;  %v5868_v63 = vmov 0   ;;  %v5885_v22 = vld [vmem:[#allocation26_spill] sm:$0xff] }
 0x2a7   : > { %1949 = vperm.xlu2 %2987, %v1846_v30   ;;  %v1309_v30 = vsub.f32 %v5884_v35, %v5883_v61  ;;  %v5905_v61 = vld [vmem:[#allocation57_spill] sm:$0xff] }
 0x2a8   : > { %1955 = vperm.xlu1 %2986, %v1848_v45   ;;  %v5886_v45 = vld [vmem:[#allocation27_spill] sm:$0xff]  ;;  %v5906_v35 = vsub.f32 %v5904_v11, %v5905_v61 }
 0x2a9   : > { %v4958_v38 = vmul.f32 0.5, %v1309_v30 }
 0x2aa   : > { %v5012_v30 = vmul.f32 0.5, %v5906_v35 }
 0x2ad   : > { %v1780_v53 = vpop.permute.xlu1 %1779 }
 0x2ae   : > { %v1851_v27 = vsub.f32 %v4603_v60, %v1780_v53  ;;  %v1794_v60 = vpop.permute.xlu2 %1793 }
 0x2af   : > { %1958 = vperm.xlu2 %2987, %v1849_v62   ;;  %v1858_v48 = vsub.f32 %v4621_v44, %v1794_v60  ;;  %v5873_v44 = vld [vmem:[#allocation41_spill] sm:$0xff]  ;;  %v1311_v62 = vsub.f32 %v5886_v45, %v5885_v22  ;;  %v5891_v60 = vld [vmem:[#allocation55_spill] sm:$0xff]  ;;  %v5907_v22 = vld [vmem:[#allocation64_spill] sm:$0xff] }
 0x2b0   : > { %1964 = vperm.xlu1 %2986, %v1851_v27   ;;  %v5874_v59 = vsub.f32 %v5872_v33, %v5873_v44  ;;  %v5899_v44 = vld [vmem:[#allocation58_spill] sm:$0xff]  ;;  %v5908_v45 = vld [vmem:[#allocation13_spill] sm:$0xff] }
 0x2b1   : > { %v4960_v27 = vmul.f32 0.5, %v1311_v62  ;;  %v5909_v62 = vsub.f32 %v5907_v22, %v5908_v45  ;;  %v5920_v22 = vld [vmem:[#allocation17_spill] sm:$0xff] }
 0x2b2   : > { %v4925_v18 = vmul.f32 0.5, %v5874_v59  ;;  %v5900_v59 = vld [vmem:[#allocation56_spill] sm:$0xff]  ;;  %v5921_v45 = vld [vmem:[#allocation21_spill] sm:$0xff] }
 0x2b3   : > { %v5901_v0 = vsub.f32 %v5899_v44, %v5900_v59  ;;  %v5916_v44 = vld [vmem:[#allocation25_spill] sm:$0xff] }
 0x2b5   : > { %v1786_v4 = vpop.permute.xlu1 %1785  ;;  %v4997_v52 = vmul.f32 0.5, %v5901_v0 }
 0x2b6   : > { %v1854_v32 = vsub.f32 %v4619_v16, %v1786_v4  ;;  %v4912_v16 = vpop.permute.xlu0 %1747  ;;  %v5888_v4 = vld [vmem:[#allocation36_spill] sm:$0xff] }
 0x2b7   : > { %1967 = vperm.xlu2 %2987, %v1852_v8  }
 0x2b8   : > { %1973 = vperm.xlu1 %2986, %v1854_v32   ;;  %v5889_v32 = vld [vmem:[#allocation37_spill] sm:$0xff] }
 0x2b9   : > { %v1312_v40 = vsub.f32 %v5889_v32, %v5888_v4  ;;  %v5017_v4 = vmul.f32 0.5, %v5909_v62  ;;  %v5922_v62 = vsub.f32 %v5920_v22, %v5921_v45 }
 0x2bd   : > { %v1792_v5 = vpop.permute.xlu1 %1791 }
 0x2be   : > { %v1857_v56 = vsub.f32 %v4629_v28, %v1792_v5  ;;  %v5870_v28 = vld [vmem:[#allocation33_spill] sm:$0xff]  ;;  %v4934_v55 = vpop.permute.xlu0 %1753  ;;  %v4972_v5 = vmul.f32 0.5, %v1312_v40 }
 0x2bf   : > { %1976 = vperm.xlu2 %2987, %v1855_v49   ;;  %v5871_v6 = vsub.f32 %v5869_v24, %v5870_v28  ;;  %v5896_v24 = vld [vmem:[#allocation54_spill] sm:$0xff]  ;;  %v5897_v28 = vld [vmem:[#allocation53_spill] sm:$0xff] }
 0x2c0   : > { %1982 = vperm.xlu1 %2986, %v1857_v56  }
 0x2c1   : > { %v4920_v36 = vmul.f32 0.5, %v5871_v6  ;;  %v5898_v6 = vsub.f32 %v5896_v24, %v5897_v28 }
 0x2c3   : > { %v4992_v33 = vmul.f32 0.5, %v5898_v6  ;;  %v5915_v6 = vld [vmem:[#allocation14_spill] sm:$0xff] }
 0x2c4   : > { %v5917_v59 = vsub.f32 %v5915_v6, %v5916_v44 }
 0x2c6   : > { %v4956_v53 = vpop.permute.xlu0 %1759  ;;  %v5037_v0 = vmul.f32 0.5, %v5917_v59 }
 0x2c7   : > { %1985 = vperm.xlu2 %2987, %v1858_v48   ;;  %v5892_v48 = vld [vmem:[#allocation52_spill] sm:$0xff] }
 0x2c8   : > { %2090 = vrot.lane.b32.xlu1 %v4910_v2, %s3090_s26  ;;  %v5893_v31 = vsub.f32 %v5891_v60, %v5892_v48  ;;  %v5912_v48 = vld [vmem:[#allocation22_spill] sm:$0xff] }
 0x2c9   : > { %2989 = vset.pattern.permute.xlu1 %v5868_v63 }
 0x2ca   : > { %v4979_v54 = vmul.f32 0.5, %v5893_v31  ;;  %v5913_v31 = vld [vmem:[#allocation12_spill] sm:$0xff] }
 0x2cb   : > { %v5914_v24 = vsub.f32 %v5912_v48, %v5913_v31  ;;  %v5052_v48 = vmul.f32 0.5, %v5922_v62  ;;  %v5923_v31 = vld [vmem:[#allocation24_spill] sm:$0xff] }
 0x2cd   : > { %v4970_v49 = vpop.permute.xlu1 %1895  ;;  %v5032_v28 = vmul.f32 0.5, %v5914_v24  ;;  %v5924_v24 = vld [vmem:[#allocation65_spill] sm:$0xff] }
 0x2ce   : > { %5890 = vst [vmem:[#allocation39_spill] sm:$0xff] %v4970_v49  ;;  %v4974_v56 = vpop.permute.xlu0 %1765  ;;  %v5925_v6 = vsub.f32 %v5923_v31, %v5924_v24  ;;  %v5931_v31 = vld [vmem:[#allocation67_spill] sm:$0xff] }
 0x2cf   : > { %2092 = vrot.lane.b32.xlu2 %v4920_v36, %s3090_s26  ;;  %v5932_v24 = vld [vmem:[#allocation19_spill] sm:$0xff] }
 0x2d0   : > { %2096 = vrot.lane.b32.xlu1 %v4925_v18, %s3090_s26  ;;  %2988 = vset.pattern.permute.xlu2 %v5868_v63  ;;  %v5057_v44 = vmul.f32 0.5, %v5925_v6  ;;  %v5933_v6 = vsub.f32 %v5931_v31, %v5932_v24 }
 0x2d1   : > { %v4932_v13 = vpop.permute.xlu2 %1898 }
 0x2d2   : > { %5875 = vst [vmem:[#allocation44_spill] sm:$0xff] %v4932_v13 }
 0x2d6   : > { %v5001_v10 = vpop.permute.xlu0 %1771 }
 0x2d7   : > { %2098 = vrot.lane.b32.xlu2 %v4939_v20, %s3090_s26 }
 0x2d8   : > { %2102 = vrot.lane.b32.xlu1 %v4944_v42, %s3090_s26 }
 0x2d9   : > { %v4950_v17 = vpop.permute.xlu2 %1904 }
 0x2da   : > { %5882 = vst [vmem:[#allocation48_spill] sm:$0xff] %v4950_v17 }
 0x2de   : > { %v5025_v40 = vpop.permute.xlu0 %1777 }
 0x2df   : > { %2104 = vrot.lane.b32.xlu2 %v4958_v38, %s3090_s26 }
 0x2e0   : > { %2108 = vrot.lane.b32.xlu1 %v4960_v27, %s3090_s26 }
 0x2e1   : > { %v4966_v8 = vpop.permute.xlu2 %1913 }
 0x2e2   : > { %5887 = vst [vmem:[#allocation34_spill] sm:$0xff] %v4966_v8  ;;  %v5939_v8 = vld [vmem:[#allocation15_spill] sm:$0xff] }
 0x2e6   : > { %v5047_v35 = vpop.permute.xlu0 %1783 }
 0x2e7   : > { %2110 = vrot.lane.b32.xlu2 %v4972_v5, %s3090_s26 }
 0x2e8   : > { %2114 = vrot.lane.b32.xlu1 %v4979_v54, %s3090_s26 }
 0x2e9   : > { %v4985_v15 = vpop.permute.xlu2 %1922 }
 0x2ea   : > { %5894 = vst [vmem:[#allocation45_spill] sm:$0xff] %v4985_v15  ;;  %v4987_v63 = vpop.permute.xlu1 %1901  ;;  %v5935_v15 = vld [vmem:[#allocation68_spill] sm:$0xff] }
 0x2eb   : > { %5895 = vst [vmem:[#allocation46_spill] sm:$0xff] %v4987_v63 }
 0x2ee   : > { %v5072_v62 = vpop.permute.xlu0 %1789 }
 0x2ef   : > { %2116 = vrot.lane.b32.xlu2 %v4992_v33, %s3090_s26 }
 0x2f0   : > { %2120 = vrot.lane.b32.xlu1 %v4997_v52, %s3090_s26 }
 0x2f1   : > { %v5005_v46 = vpop.permute.xlu2 %1931 }
 0x2f2   : > { %5902 = vst [vmem:[#allocation50_spill] sm:$0xff] %v5005_v46  ;;  %v5007_v26 = vpop.permute.xlu1 %1910  ;;  %v5929_v46 = vld [vmem:[#allocation18_spill] sm:$0xff] }
 0x2f3   : > { %5903 = vst [vmem:[#allocation49_spill] sm:$0xff] %v5007_v26 }
 0x2f6   : > { %v2089_v24 = vpop.permute.xlu0 %2088 }
 0x2f7   : > { %2122 = vrot.lane.b32.xlu2 %v5012_v30, %s3090_s26 }
 0x2f8   : > { %2126 = vrot.lane.b32.xlu1 %v5017_v4, %s3090_s26 }
 0x2f9   : > { %v5023_v32 = vpop.permute.xlu2 %1940 }
 0x2fa   : > { %5910 = vst [vmem:[#allocation38_spill] sm:$0xff] %v5023_v32  ;;  %v5027_v60 = vpop.permute.xlu1 %1919  ;;  %v5928_v32 = vld [vmem:[#allocation66_spill] sm:$0xff] }
 0x2fb   : > { %5911 = vst [vmem:[#allocation61_spill] sm:$0xff] %v5027_v60  ;;  %v5930_v22 = vsub.f32 %v5928_v32, %v5929_v46  ;;  %v5936_v46 = vld [vmem:[#allocation20_spill] sm:$0xff]  ;;  %v5938_v60 = vld [vmem:[#allocation69_spill] sm:$0xff] }
 0x2fc   : > { %v5937_v32 = vsub.f32 %v5935_v15, %v5936_v46  ;;  %v5940_v26 = vsub.f32 %v5938_v60, %v5939_v8  ;;  %v2184_v15 = vadd.f32 %v2089_v24, %v4779_v29 }
 0x2fd   : > { %v5070_v45 = vmul.f32 0.5, %v5930_v22 }
 0x2fe   : > { %v5088_v22 = vmul.f32 0.5, %v5937_v32  ;;  %v5093_v31 = vmul.f32 0.5, %v5940_v26  ;;  %v2095_v32 = vpop.permute.xlu0 %2094 }
 0x2ff   : > { %2128 = vrot.lane.b32.xlu2 %v5032_v28, %s3090_s26  ;;  %v2187_v17 = vadd.f32 %v2095_v32, %v4795_v51 }
 0x300   : > { %2132 = vrot.lane.b32.xlu1 %v5037_v0, %s3090_s26 }
 0x301   : > { %v5043_v11 = vpop.permute.xlu2 %1949 }
 0x302   : > { %5918 = vst [vmem:[#allocation32_spill] sm:$0xff] %v5043_v11  ;;  %v5045_v61 = vpop.permute.xlu1 %1928 }
 0x303   : > { %5919 = vst [vmem:[#allocation62_spill] sm:$0xff] %v5045_v61  ;;  %v5077_v61 = vmul.f32 0.5, %v5933_v6 }
 0x306   : > { %v2101_v24 = vpop.permute.xlu0 %2100 }
 0x307   : > { %2134 = vrot.lane.b32.xlu2 %v5052_v48, %s3090_s26 }
 0x308   : > { %2138 = vrot.lane.b32.xlu1 %v5057_v44, %s3090_s26 }
 0x309   : > { %v5063_v59 = vpop.permute.xlu2 %1958 }
 0x30a   : > { %5926 = vst [vmem:[#allocation10_spill] sm:$0xff] %v5063_v59  ;;  %v5065_v11 = vpop.permute.xlu1 %1937 }
 0x30b   : > { %5927 = vst [vmem:[#allocation60_spill] sm:$0xff] %v5065_v11 }
 0x30f   : > { %2140 = vrot.lane.b32.xlu2 %v5070_v45, %s3090_s26 }
 0x310   : > { %2144 = vrot.lane.b32.xlu1 %v5077_v61, %s3090_s26 }
 0x311   : > { %v1968_v59 = vpop.permute.xlu2 %1967 }
 0x312   : > { %v5083_v11 = vpop.permute.xlu1 %1946  ;;  %v2012_v26 = vperm.slane %v1968_v59, %v4691_v37 }
 0x313   : > { %5934 = vst [vmem:[#allocation16_spill] sm:$0xff] %v5083_v11 }
 0x317   : > { %2146 = vrot.lane.b32.xlu2 %v5088_v22, %s3090_s26 }
 0x318   : > { %2150 = vrot.lane.b32.xlu1 %v5093_v31, %s3090_s26 }
 0x319   : > { %v5099_v6 = vpop.permute.xlu2 %1976 }
 0x31a   : > { %5941 = vst [vmem:[#allocation23_spill] sm:$0xff] %v5099_v6  ;;  %v5101_v11 = vpop.permute.xlu1 %1955 }
 0x31b   : > { %5942 = vst [vmem:[#allocation31_spill] sm:$0xff] %v5101_v11 }
 0x31f   : > { %2249 = vperm.xlu2 %2988, %v2184_v15  }
 0x321   : > { %v5104_v46 = vpop.permute.xlu2 %1985 }
 0x322   : > { %5943 = vst [vmem:[#allocation30_spill] sm:$0xff] %v5104_v46  ;;  %v1965_v8 = vpop.permute.xlu1 %1964 }
 0x323   : > { %v2011_v60 = vperm.slane %v1965_v8, %v4691_v37  ;;  %v2107_v8 = vpop.permute.xlu0 %2106 }
 0x325   : > { %v5110_v63 = vsel %vm1687_vm1, %v2012_v26, %v2011_v60 }
 0x326   : > { %5944 = vst [vmem:[#allocation35_spill] sm:$0xff] %v5110_v63  ;;  %v2190_v63 = vadd.f32 %v2101_v24, %v4808_v9 }
 0x327   : > { %2258 = vperm.xlu2 %2988, %v2187_v17  }
 0x329   : > { %v2093_v6 = vpop.permute.xlu2 %2092 }
 0x32a   : > { %v2186_v11 = vadd.f32 %v2093_v6, %v4920_v36  ;;  %v5113_v13 = vpop.permute.xlu1 %1973 }
 0x32b   : > { %5945 = vst [vmem:[#allocation33_spill] sm:$0xff] %v5113_v13  ;;  %v2113_v13 = vpop.permute.xlu0 %2112 }
 0x32c   : > { %2255 = vperm.xlu1 %2989, %v2186_v11  }
 0x331   : > { %v2099_v15 = vpop.permute.xlu2 %2098 }
 0x332   : > { %v2189_v46 = vadd.f32 %v2099_v15, %v4939_v20  ;;  %v5116_v49 = vpop.permute.xlu1 %1982 }
 0x333   : > { %5946 = vst [vmem:[#allocation40_spill] sm:$0xff] %v5116_v49 }
 0x334   : > { %2264 = vperm.xlu2 %2988, %v2189_v46  }
 0x339   : > { %v2105_v59 = vpop.permute.xlu2 %2104 }
 0x33a   : > { %v2192_v32 = vadd.f32 %v2105_v59, %v4958_v38  ;;  %v2091_v26 = vpop.permute.xlu1 %2090 }
 0x33b   : > { %v2185_v17 = vadd.f32 %v2091_v26, %v4910_v2  ;;  %v2193_v26 = vadd.f32 %v2107_v8, %v4822_v43 }
 0x33c   : > { %2273 = vperm.xlu2 %2988, %v2192_v32  }
 0x33d   : > { %2252 = vperm.xlu0 %2985, %v2185_v17   ;;  %v2119_v17 = vpop.permute.xlu0 %2118 }
 0x341   : > { %v2111_v6 = vpop.permute.xlu2 %2110 }
 0x342   : > { %v2195_v60 = vadd.f32 %v2111_v6, %v4972_v5  ;;  %v2097_v11 = vpop.permute.xlu1 %2096 }
 0x343   : > { %v2188_v15 = vadd.f32 %v2097_v11, %v4925_v18 }
 0x344   : > { %2282 = vperm.xlu2 %2988, %v2195_v60   ;;  %v2196_v60 = vadd.f32 %v2113_v13, %v4838_v58 }
 0x345   : > { %2267 = vperm.xlu0 %2985, %v2190_v63   ;;  %2261 = vperm.xlu1 %2989, %v2188_v15   ;;  %v2125_v15 = vpop.permute.xlu0 %2124 }
 0x349   : > { %v2117_v46 = vpop.permute.xlu2 %2116 }
 0x34a   : > { %v2198_v59 = vadd.f32 %v2117_v46, %v4992_v33  ;;  %v2103_v49 = vpop.permute.xlu1 %2102 }
 0x34b   : > { %v2191_v32 = vadd.f32 %v2103_v49, %v4944_v42 }
 0x34c   : > { %2291 = vperm.xlu2 %2988, %v2198_v59   ;;  %v2199_v59 = vadd.f32 %v2119_v17, %v4847_v7 }
 0x34d   : > { %2276 = vperm.xlu0 %2985, %v2193_v26   ;;  %2270 = vperm.xlu1 %2989, %v2191_v32  }
 0x351   : > { %v2123_v6 = vpop.permute.xlu2 %2122 }
 0x352   : > { %v2201_v24 = vadd.f32 %v2123_v6, %v5012_v30  ;;  %v2109_v11 = vpop.permute.xlu1 %2108  ;;  %v2131_v6 = vpop.permute.xlu0 %2130 }
 0x353   : > { %v2194_v63 = vadd.f32 %v2109_v11, %v4960_v27 }
 0x354   : > { %2300 = vperm.xlu2 %2988, %v2201_v24   ;;  %v2202_v24 = vadd.f32 %v2125_v15, %v4856_v3 }
 0x355   : > { %2285 = vperm.xlu0 %2985, %v2196_v60   ;;  %2279 = vperm.xlu1 %2989, %v2194_v63  }
 0x359   : > { %v2129_v46 = vpop.permute.xlu2 %2128 }
 0x35a   : > { %v2204_v8 = vadd.f32 %v2129_v46, %v5032_v28  ;;  %v2115_v49 = vpop.permute.xlu1 %2114 }
 0x35b   : > { %v2197_v26 = vadd.f32 %v2115_v49, %v4979_v54 }
 0x35c   : > { %2309 = vperm.xlu2 %2988, %v2204_v8   ;;  %v2205_v8 = vadd.f32 %v2131_v6, %v4865_v34 }
 0x35d   : > { %2294 = vperm.xlu0 %2985, %v2199_v59   ;;  %2288 = vperm.xlu1 %2989, %v2197_v26   ;;  %v2137_v59 = vpop.permute.xlu0 %2136 }
 0x361   : > { %v2135_v32 = vpop.permute.xlu2 %2134 }
 0x362   : > { %v2207_v13 = vadd.f32 %v2135_v32, %v5052_v48  ;;  %v2121_v11 = vpop.permute.xlu1 %2120 }
 0x363   : > { %v2200_v60 = vadd.f32 %v2121_v11, %v4997_v52 }
 0x364   : > { %2318 = vperm.xlu2 %2988, %v2207_v13   ;;  %v2208_v13 = vadd.f32 %v2137_v59, %v4874_v39 }
 0x365   : > { %2303 = vperm.xlu0 %2985, %v2202_v24   ;;  %2297 = vperm.xlu1 %2989, %v2200_v60   ;;  %v2143_v24 = vpop.permute.xlu0 %2142 }
 0x366   : > { %v2211_v6 = vadd.f32 %v2143_v24, %v4883_v50 }
 0x369   : > { %v2141_v63 = vpop.permute.xlu2 %2140 }
 0x36a   : > { %v2210_v17 = vadd.f32 %v2141_v63, %v5070_v45  ;;  %v2127_v46 = vpop.permute.xlu1 %2126 }
 0x36b   : > { %v2203_v49 = vadd.f32 %v2127_v46, %v5017_v4  ;;  %v5947_v46 = vmov 1  }
 0x36c   : > { %2327 = vperm.xlu2 %2988, %v2210_v17  }
 0x36d   : > { %2312 = vperm.xlu0 %2985, %v2205_v8   ;;  %2306 = vperm.xlu1 %2989, %v2203_v49   ;;  %v2149_v8 = vpop.permute.xlu0 %2148 }
 0x36e   : > { %v2214_v59 = vadd.f32 %v2149_v8, %v4892_v21 }
 0x371   : > { %v2147_v26 = vpop.permute.xlu2 %2146 }
 0x372   : > { %v2213_v15 = vadd.f32 %v2147_v26, %v5088_v22  ;;  %v2133_v32 = vpop.permute.xlu1 %2132 }
 0x373   : > { %v2206_v11 = vadd.f32 %v2133_v32, %v5037_v0 }
 0x374   : > { %2336 = vperm.xlu2 %2988, %v2213_v15  }
 0x375   : > { %2321 = vperm.xlu0 %2985, %v2208_v13   ;;  %2315 = vperm.xlu1 %2989, %v2206_v11   ;;  %v1827_v11 = vsub.f32 %v5836_v41, %v4829_v23  ;;  %v1835_v41 = vsub.f32 %v5844_v19, %v4912_v16  ;;  %v5948_v23 = vld [vmem:[#allocation51_spill] sm:$0xff] }
 0x376   : > { %v5949_v19 = vld [vmem:[#allocation63_spill] sm:$0xff] }
 0x377   : > { %v1841_v16 = vsub.f32 %v5949_v19, %v4956_v53 }
 0x379   : > { %v2250_v17 = vpop.permute.xlu2 %2249 }
 0x37a   : > { %v2139_v60 = vpop.permute.xlu1 %2138 }
 0x37b   : > { %v2209_v63 = vadd.f32 %v2139_v60, %v5057_v44  ;;  %v1832_v60 = vsub.f32 %v5841_v1, %v4903_v25  ;;  %v1838_v25 = vsub.f32 %v5948_v23, %v4934_v55 }
 0x37c   : > { %2413 = vrot.lane.b32.xlu2 %v4779_v29, %s3092_s27 }
 0x37d   : > { %2330 = vperm.xlu0 %2985, %v2211_v6   ;;  %2324 = vperm.xlu1 %2989, %v2209_v63  }
 0x37e   : > { %2992 = vset.pattern.permute.xlu2 %v5947_v46 }
 0x381   : > { %v2259_v15 = vpop.permute.xlu2 %2258 }
 0x382   : > { %v2145_v49 = vpop.permute.xlu1 %2144 }
 0x383   : > { %v2212_v26 = vadd.f32 %v2145_v49, %v5077_v61 }
 0x384   : > { %2419 = vrot.lane.b32.xlu2 %v4795_v51, %s3092_s27 }
 0x385   : > { %2339 = vperm.xlu0 %2985, %v2214_v59   ;;  %2333 = vperm.xlu1 %2989, %v2212_v26   ;;  %v2344_v59 = vperm.slane %v2250_v17, %v4691_v37  ;;  %v1844_v26 = vsub.f32 %v4340_v47, %v4974_v56 }
 0x38a   : > { %v2151_v32 = vpop.permute.xlu1 %2150 }
 0x38b   : > { %v2215_v13 = vadd.f32 %v2151_v32, %v5093_v31 }
 0x38c   : > { %2425 = vrot.lane.b32.xlu2 %v4808_v9, %s3092_s27 }
 0x38d   : > { %2990 = vset.pattern.permute.xlu0 %v5947_v46  ;;  %2342 = vperm.xlu1 %2989, %v2215_v13  }
 0x38e   : > { %1892 = vperm.xlu0 %2990, %v1827_v11   ;;  %v2265_v24 = vpop.permute.xlu2 %2264 }
 0x38f   : > { %v2349_v19 = vperm.slane %v2265_v24, %v4691_v37  ;;  %v5950_v24 = vld [vmem:[#allocation70_spill] sm:$0xff] }
 0x394   : > { %2431 = vrot.lane.b32.xlu2 %v4822_v43, %s3092_s27 }
 0x395   : > { %2417 = vrot.lane.b32.xlu1 %v4920_v36, %s3092_s27 }
 0x396   : > { %1907 = vperm.xlu0 %2990, %v1832_v60   ;;  %v2274_v6 = vpop.permute.xlu2 %2273  ;;  %2991 = vset.pattern.permute.xlu1 %v5947_v46 }
 0x39c   : > { %2437 = vrot.lane.b32.xlu2 %v4838_v58, %s3092_s27 }
 0x39d   : > { %2423 = vrot.lane.b32.xlu1 %v4939_v20, %s3092_s27 }
 0x39e   : > { %1916 = vperm.xlu0 %2990, %v1835_v41   ;;  %v2283_v1 = vpop.permute.xlu2 %2282  ;;  %v2256_v46 = vpop.permute.xlu1 %2255  ;;  %v2347_v41 = vperm.slane %v2259_v15, %v4691_v37 }
 0x39f   : > { %v2346_v32 = vperm.slane %v2256_v46, %v4691_v37 }
 0x3a4   : > { %2443 = vrot.lane.b32.xlu2 %v4847_v7, %s3092_s27 }
 0x3a5   : > { %2429 = vrot.lane.b32.xlu1 %v4958_v38, %s3092_s27 }
 0x3a6   : > { %1925 = vperm.xlu0 %2990, %v1838_v25   ;;  %v5175_v63 = vpop.permute.xlu2 %2291  ;;  %v1847_v25 = vsub.f32 %v4481_v14, %v5001_v10 }
 0x3ac   : > { %2449 = vrot.lane.b32.xlu2 %v4856_v3, %s3092_s27 }
 0x3ad   : > { %2435 = vrot.lane.b32.xlu1 %v4972_v5, %s3092_s27 }
 0x3ae   : > { %1934 = vperm.xlu0 %2990, %v1841_v16   ;;  %v5183_v55 = vpop.permute.xlu2 %2300 }
 0x3af   : > { %v2253_v8 = vpop.permute.xlu0 %2252 }
 0x3b0   : > { %v2345_v49 = vperm.slane %v2253_v8, %v4691_v37 }
 0x3b2   : > { %v2376_v53 = vsel %vm1687_vm1, %v2345_v49, %v2344_v59 }
 0x3b3   : > { %v2377_v11 = vsel %vm1689_vm2, %v2346_v32, %v2376_v53 }
 0x3b4   : > { %2455 = vrot.lane.b32.xlu2 %v4865_v34, %s3092_s27  ;;  %v2378_v56 = vsel %vm1691_vm3, %v2347_v41, %v2377_v11 }
 0x3b5   : > { %2441 = vrot.lane.b32.xlu1 %v4992_v33, %s3092_s27 }
 0x3b6   : > { %1943 = vperm.xlu0 %2990, %v1844_v26   ;;  %v5195_v13 = vpop.permute.xlu2 %2309  ;;  %v1850_v26 = vsub.f32 %v5950_v24, %v5025_v40 }
 0x3b7   : > { %v2268_v60 = vpop.permute.xlu0 %2267  ;;  %v2262_v17 = vpop.permute.xlu1 %2261 }
 0x3b8   : > { %v2348_v47 = vperm.slane %v2262_v17, %v4691_v37  ;;  %v2350_v16 = vperm.slane %v2268_v60, %v4691_v37  ;;  %v2352_v60 = vperm.slane %v2274_v6, %v4691_v37 }
 0x3ba   : > { %v2379_v23 = vsel %vm1693_vm4, %v2348_v47, %v2378_v56  ;;  %v1853_v56 = vsub.f32 %v4586_v57, %v5047_v35  ;;  %v2358_v57 = vperm.slane %v5175_v63, %v4691_v37 }
 0x3bb   : > { %v2380_v15 = vsel %vm1695_vm5, %v2349_v19, %v2379_v23  ;;  %v2355_v23 = vperm.slane %v2283_v1, %v4691_v37 }
 0x3bc   : > { %2461 = vrot.lane.b32.xlu2 %v4874_v39, %s3092_s27  ;;  %v2381_v14 = vsel %vm1697_vm6, %v2350_v16, %v2380_v15 }
 0x3bd   : > { %2447 = vrot.lane.b32.xlu1 %v5012_v30, %s3092_s27 }
 0x3be   : > { %1952 = vperm.xlu0 %2990, %v1847_v25   ;;  %v5211_v49 = vpop.permute.xlu2 %2318 }
 0x3bf   : > { %v2277_v46 = vpop.permute.xlu0 %2276  ;;  %v2271_v8 = vpop.permute.xlu1 %2270 }
 0x3c0   : > { %v2351_v59 = vperm.slane %v2271_v8, %v4691_v37  ;;  %v2353_v53 = vperm.slane %v2277_v46, %v4691_v37 }
 0x3c2   : > { %v2382_v10 = vsel %vm1699_vm7, %v2351_v59, %v2381_v14  ;;  %v2383_v41 = vsel %vm1687_vm1, %v2353_v53, %v2352_v60  ;;  %v1856_v59 = vsub.f32 %v4607_v12, %v5072_v62  ;;  %v2361_v53 = vperm.slane %v5183_v55, %v4691_v37 }
 0x3c3   : > { %2878 = vst.msk [vmem:[%s4721_s29 + $0x40] sm:$0xff] %vm1726_vm8, %v2382_v10 }
 0x3c4   : > { %2467 = vrot.lane.b32.xlu2 %v4883_v50, %s3092_s27 }
 0x3c5   : > { %2453 = vrot.lane.b32.xlu1 %v5032_v28, %s3092_s27 }
 0x3c6   : > { %1961 = vperm.xlu0 %2990, %v1850_v26   ;;  %v5228_v47 = vpop.permute.xlu2 %2327 }
 0x3c7   : > { %v2286_v32 = vpop.permute.xlu0 %2285  ;;  %v2280_v11 = vpop.permute.xlu1 %2279 }
 0x3c8   : > { %v2354_v17 = vperm.slane %v2280_v11, %v4691_v37  ;;  %v2356_v25 = vperm.slane %v2286_v32, %v4691_v37 }
 0x3ca   : > { %v2384_v40 = vsel %vm1689_vm2, %v2354_v17, %v2383_v41 }
 0x3cb   : > { %v2385_v6 = vsel %vm1691_vm3, %v2355_v23, %v2384_v40 }
 0x3cc   : > { %2473 = vrot.lane.b32.xlu2 %v4892_v21, %s3092_s27  ;;  %v2386_v35 = vsel %vm1693_vm4, %v2356_v25, %v2385_v6 }
 0x3cd   : > { %2459 = vrot.lane.b32.xlu1 %v5052_v48, %s3092_s27 }
 0x3ce   : > { %1970 = vperm.xlu0 %2990, %v1853_v56   ;;  %v2337_v14 = vpop.permute.xlu2 %2336  ;;  %v2364_v56 = vperm.slane %v5195_v13, %v4691_v37 }
 0x3cf   : > { %v2295_v19 = vpop.permute.xlu0 %2294  ;;  %v2289_v15 = vpop.permute.xlu1 %2288 }
 0x3d0   : > { %v2357_v16 = vperm.slane %v2289_v15, %v4691_v37  ;;  %v2359_v1 = vperm.slane %v2295_v19, %v4691_v37 }
 0x3d2   : > { %v2387_v46 = vsel %vm1695_vm5, %v2357_v16, %v2386_v35 }
 0x3d3   : > { %v2388_v8 = vsel %vm1697_vm6, %v2358_v57, %v2387_v46 }
 0x3d4   : > { %v2389_v10 = vsel %vm1699_vm7, %v2359_v1, %v2388_v8 }
 0x3d5   : > { %2879 = vst.msk [vmem:[%s4721_s29 + $0x48] sm:$0xff] %vm1726_vm8, %v2389_v10  ;;  %2465 = vrot.lane.b32.xlu1 %v5070_v45, %s3092_s27 }
 0x3d6   : > { %1979 = vperm.xlu0 %2990, %v1856_v59   ;;  %v2414_v12 = vpop.permute.xlu2 %2413 }
 0x3d7   : > { %v2304_v63 = vpop.permute.xlu0 %2303  ;;  %v2298_v24 = vpop.permute.xlu1 %2297  ;;  %v2509_v40 = vsub.f32 %v4779_v29, %v2414_v12  ;;  %v2367_v29 = vperm.slane %v5211_v49, %v4691_v37 }
 0x3d8   : > { %v2360_v26 = vperm.slane %v2298_v24, %v4691_v37  ;;  %v2362_v62 = vperm.slane %v2304_v63, %v4691_v37  ;;  %v2370_v63 = vperm.slane %v5228_v47, %v4691_v37 }
 0x3da   : > { %v2390_v32 = vsel %vm1687_vm1, %v2361_v53, %v2360_v26 }
 0x3db   : > { %v2391_v41 = vsel %vm1689_vm2, %v2362_v62, %v2390_v32 }
 0x3dd   : > { %2471 = vrot.lane.b32.xlu1 %v5088_v22, %s3092_s27 }
 0x3de   : > { %2415 = vrot.lane.b32.xlu0 %v4910_v2, %s3092_s27  ;;  %v2420_v15 = vpop.permute.xlu2 %2419 }
 0x3df   : > { %v2313_v11 = vpop.permute.xlu0 %2312  ;;  %v2307_v60 = vpop.permute.xlu1 %2306  ;;  %v2512_v35 = vsub.f32 %v4795_v51, %v2420_v15 }
 0x3e0   : > { %v2363_v17 = vperm.slane %v2307_v60, %v4691_v37  ;;  %v2365_v6 = vperm.slane %v2313_v11, %v4691_v37  ;;  %v2373_v11 = vperm.slane %v2337_v14, %v4691_v37  ;;  %v5952_v14 = vld [vmem:[#allocation44_spill] sm:$0xff] }
 0x3e2   : > { %v2392_v55 = vsel %vm1691_vm3, %v2363_v17, %v2391_v41 }
 0x3e3   : > { %v2393_v23 = vsel %vm1693_vm4, %v2364_v56, %v2392_v55  ;;  %v5951_v55 = vld [vmem:[#allocation39_spill] sm:$0xff] }
 0x3e4   : > { %v2394_v57 = vsel %vm1695_vm5, %v2365_v6, %v2393_v23  ;;  %v1988_v56 = vperm.slane %v5951_v55, %v4691_v37 }
 0x3e5   : > { %2574 = vperm.xlu1 %2991, %v2509_v40  }
 0x3e6   : > { %2421 = vrot.lane.b32.xlu0 %v4925_v18, %s3092_s27 }
 0x3e7   : > { %v2322_v25 = vpop.permute.xlu0 %2321  ;;  %v2316_v19 = vpop.permute.xlu1 %2315 }
 0x3e8   : > { %v2366_v16 = vperm.slane %v2316_v19, %v4691_v37  ;;  %v2368_v49 = vperm.slane %v2322_v25, %v4691_v37  ;;  %v1989_v25 = vperm.slane %v5952_v14, %v4691_v37 }
 0x3ea   : > { %v2395_v13 = vsel %vm1697_vm6, %v2366_v16, %v2394_v57 }
 0x3eb   : > { %v2396_v1 = vsel %vm1699_vm7, %v2367_v29, %v2395_v13  ;;  %v5953_v29 = vld [vmem:[#allocation46_spill] sm:$0xff] }
 0x3ec   : > { %2880 = vst.msk [vmem:[%s4721_s29 + $0x50] sm:$0xff] %vm1726_vm8, %v2396_v1  ;;  %v1990_v57 = vperm.slane %v5953_v29, %v4691_v37  ;;  %v5954_v1 = vld [vmem:[#allocation48_spill] sm:$0xff]  ;;  %v5960_v29 = vld [vmem:[#allocation50_spill] sm:$0xff] }
 0x3ed   : > { %2583 = vperm.xlu1 %2991, %v2512_v35  }
 0x3ee   : > { %2427 = vrot.lane.b32.xlu0 %v4944_v42, %s3092_s27 }
 0x3ef   : > { %v2331_v46 = vpop.permute.xlu0 %2330  ;;  %v2325_v8 = vpop.permute.xlu1 %2324 }
 0x3f0   : > { %v2369_v59 = vperm.slane %v2325_v8, %v4691_v37  ;;  %v2371_v53 = vperm.slane %v2331_v46, %v4691_v37  ;;  %v1991_v46 = vperm.slane %v5954_v1, %v4691_v37 }
 0x3f2   : > { %v2397_v10 = vsel %vm1687_vm1, %v2369_v59, %v2368_v49  ;;  %v5955_v49 = vld [vmem:[#allocation49_spill] sm:$0xff] }
 0x3f3   : > { %v2398_v51 = vsel %vm1689_vm2, %v2370_v63, %v2397_v10  ;;  %v1993_v10 = vperm.slane %v5955_v49, %v4691_v37 }
 0x3f4   : > { %v2399_v62 = vsel %vm1691_vm3, %v2371_v53, %v2398_v51  ;;  %v5956_v51 = vld [vmem:[#allocation34_spill] sm:$0xff] }
 0x3f6   : > { %2433 = vrot.lane.b32.xlu0 %v4960_v27, %s3092_s27 }
 0x3f7   : > { %v2340_v24 = vpop.permute.xlu0 %2339  ;;  %v2334_v26 = vpop.permute.xlu1 %2333 }
 0x3f8   : > { %v2372_v12 = vperm.slane %v2334_v26, %v4691_v37  ;;  %v2374_v60 = vperm.slane %v2340_v24, %v4691_v37  ;;  %v1994_v24 = vperm.slane %v5956_v51, %v4691_v37 }
 0x3fa   : > { %v2400_v32 = vsel %vm1693_vm4, %v2372_v12, %v2399_v62 }
 0x3fb   : > { %v2401_v47 = vsel %vm1695_vm5, %v2373_v11, %v2400_v32 }
 0x3fc   : > { %v2402_v23 = vsel %vm1697_vm6, %v2374_v60, %v2401_v47  ;;  %v5957_v60 = vld [vmem:[#allocation61_spill] sm:$0xff] }
 0x3fe   : > { %2439 = vrot.lane.b32.xlu0 %v4979_v54, %s3092_s27 }
 0x3ff   : > { %v2343_v17 = vpop.permute.xlu1 %2342 }
 0x400   : > { %v2375_v41 = vperm.slane %v2343_v17, %v4691_v37  ;;  %v1893_v40 = vpop.permute.xlu0 %1892  ;;  %v1996_v17 = vperm.slane %v5957_v60, %v4691_v37 }
 0x401   : > { %v1987_v6 = vperm.slane %v1893_v40, %v4691_v37 }
 0x402   : > { %v2403_v19 = vsel %vm1699_vm7, %v2375_v41, %v2402_v23  ;;  %v5958_v23 = vld [vmem:[#allocation45_spill] sm:$0xff] }
 0x403   : > { %2881 = vst.msk [vmem:[%s4721_s29 + $0x58] sm:$0xff] %vm1726_vm8, %v2403_v19  ;;  %v2019_v15 = vsel %vm1687_vm1, %v1988_v56, %v1987_v6  ;;  %v1997_v6 = vperm.slane %v5958_v23, %v4691_v37  ;;  %v5959_v19 = vld [vmem:[#allocation62_spill] sm:$0xff]  ;;  %v5965_v23 = vld [vmem:[#allocation31_spill] sm:$0xff] }
 0x404   : > { %v2020_v16 = vsel %vm1689_vm2, %v1989_v25, %v2019_v15  ;;  %v1999_v15 = vperm.slane %v5959_v19, %v4691_v37 }
 0x405   : > { %v2021_v35 = vsel %vm1691_vm3, %v1990_v57, %v2020_v16  ;;  %v2000_v57 = vperm.slane %v5960_v29, %v4691_v37 }
 0x406   : > { %2445 = vrot.lane.b32.xlu0 %v4997_v52, %s3092_s27  ;;  %v2022_v63 = vsel %vm1693_vm4, %v1991_v46, %v2021_v35 }
 0x407   : > { %v5317_v13 = vpop.permute.xlu1 %2417 }
 0x408   : > { %v1908_v8 = vpop.permute.xlu0 %1907  ;;  %v2511_v19 = vsub.f32 %v4920_v36, %v5317_v13 }
 0x409   : > { %v1992_v59 = vperm.slane %v1908_v8, %v4691_v37  ;;  %v5961_v8 = vld [vmem:[#allocation60_spill] sm:$0xff] }
 0x40b   : > { %v2023_v26 = vsel %vm1695_vm5, %v1992_v59, %v2022_v63  ;;  %v2002_v59 = vperm.slane %v5961_v8, %v4691_v37  ;;  %v5967_v8 = vld [vmem:[#allocation33_spill] sm:$0xff] }
 0x40c   : > { %v2024_v53 = vsel %vm1697_vm6, %v1993_v10, %v2023_v26  ;;  %v5962_v26 = vld [vmem:[#allocation38_spill] sm:$0xff] }
 0x40d   : > { %v2025_v12 = vsel %vm1699_vm7, %v1994_v24, %v2024_v53  ;;  %v2003_v53 = vperm.slane %v5962_v26, %v4691_v37 }
 0x40e   : > { %2874 = vst.msk [vmem:[%s4721_s29 + $0x20] sm:$0xff] %vm1726_vm8, %v2025_v12  ;;  %2451 = vrot.lane.b32.xlu0 %v5017_v4, %s3092_s27 }
 0x40f   : > { %v2424_v62 = vpop.permute.xlu1 %2423 }
 0x410   : > { %v2514_v32 = vsub.f32 %v4939_v20, %v2424_v62  ;;  %v1917_v11 = vpop.permute.xlu0 %1916  ;;  %v5963_v62 = vld [vmem:[#allocation16_spill] sm:$0xff] }
 0x411   : > { %v1995_v47 = vperm.slane %v1917_v11, %v4691_v37  ;;  %v5964_v11 = vld [vmem:[#allocation32_spill] sm:$0xff] }
 0x412   : > { %2589 = vperm.xlu1 %2991, %v2514_v32   ;;  %v2005_v32 = vperm.slane %v5963_v62, %v4691_v37 }
 0x413   : > { %v2026_v40 = vsel %vm1687_vm1, %v1996_v17, %v1995_v47  ;;  %v2006_v47 = vperm.slane %v5964_v11, %v4691_v37 }
 0x414   : > { %v2027_v14 = vsel %vm1689_vm2, %v1997_v6, %v2026_v40  ;;  %v2008_v6 = vperm.slane %v5965_v23, %v4691_v37 }
 0x416   : > { %2457 = vrot.lane.b32.xlu0 %v5037_v0, %s3092_s27 }
 0x417   : > { %v2430_v41 = vpop.permute.xlu1 %2429 }
 0x418   : > { %v2517_v55 = vsub.f32 %v4958_v38, %v2430_v41  ;;  %v1926_v56 = vpop.permute.xlu0 %1925 }
 0x419   : > { %v1998_v20 = vperm.slane %v1926_v56, %v4691_v37 }
 0x41a   : > { %2598 = vperm.xlu1 %2991, %v2517_v55  }
 0x41b   : > { %v2028_v25 = vsel %vm1691_vm3, %v1998_v20, %v2027_v14  ;;  %v5966_v20 = vld [vmem:[#allocation10_spill] sm:$0xff] }
 0x41c   : > { %v2029_v38 = vsel %vm1693_vm4, %v1999_v15, %v2028_v25  ;;  %v2009_v14 = vperm.slane %v5966_v20, %v4691_v37 }
 0x41d   : > { %v2030_v49 = vsel %vm1695_vm5, %v2000_v57, %v2029_v38 }
 0x41e   : > { %2463 = vrot.lane.b32.xlu0 %v5057_v44, %s3092_s27 }
 0x41f   : > { %v2436_v16 = vpop.permute.xlu1 %2435 }
 0x420   : > { %v2520_v35 = vsub.f32 %v4972_v5, %v2436_v16  ;;  %v1935_v1 = vpop.permute.xlu0 %1934 }
 0x421   : > { %v2001_v46 = vperm.slane %v1935_v1, %v4691_v37 }
 0x422   : > { %2607 = vperm.xlu1 %2991, %v2520_v35  }
 0x423   : > { %v2031_v10 = vsel %vm1697_vm6, %v2001_v46, %v2030_v49 }
 0x424   : > { %v2032_v63 = vsel %vm1699_vm7, %v2002_v59, %v2031_v10  ;;  %v2014_v59 = vperm.slane %v5967_v8, %v4691_v37  ;;  %v5969_v10 = vld [vmem:[#allocation35_spill] sm:$0xff] }
 0x425   : > { %2875 = vst.msk [vmem:[%s4721_s29 + $0x28] sm:$0xff] %vm1726_vm8, %v2032_v63 }
 0x426   : > { %2469 = vrot.lane.b32.xlu0 %v5077_v61, %s3092_s27 }
 0x427   : > { %v2442_v51 = vpop.permute.xlu1 %2441 }
 0x428   : > { %v2523_v5 = vsub.f32 %v4992_v33, %v2442_v51  ;;  %v1944_v24 = vpop.permute.xlu0 %1943 }
 0x429   : > { %v2004_v12 = vperm.slane %v1944_v24, %v4691_v37 }
 0x42a   : > { %2616 = vperm.xlu1 %2991, %v2523_v5  }
 0x42b   : > { %v2033_v60 = vsel %vm1687_vm1, %v2004_v12, %v2003_v53  ;;  %v5970_v12 = vld [vmem:[#allocation40_spill] sm:$0xff] }
 0x42c   : > { %v2034_v17 = vsel %vm1689_vm2, %v2005_v32, %v2033_v60  ;;  %v2017_v62 = vperm.slane %v5970_v12, %v4691_v37  ;;  %v5971_v32 = vld [vmem:[#allocation30_spill] sm:$0xff] }
 0x42d   : > { %v2035_v41 = vsel %vm1691_vm3, %v2006_v47, %v2034_v17  ;;  %v2018_v11 = vperm.slane %v5971_v32, %v4691_v37 }
 0x42e   : > { %2475 = vrot.lane.b32.xlu0 %v5093_v31, %s3092_s27 }
 0x42f   : > { %v2448_v33 = vpop.permute.xlu1 %2447 }
 0x430   : > { %v2526_v40 = vsub.f32 %v5012_v30, %v2448_v33  ;;  %v1953_v55 = vpop.permute.xlu0 %1952 }
 0x431   : > { %v2007_v56 = vperm.slane %v1953_v55, %v4691_v37 }
 0x432   : > { %2625 = vperm.xlu1 %2991, %v2526_v40  }
 0x433   : > { %v2036_v25 = vsel %vm1693_vm4, %v2007_v56, %v2035_v41  ;;  %v2426_v41 = vpop.permute.xlu2 %2425 }
 0x434   : > { %v2037_v15 = vsel %vm1695_vm5, %v2008_v6, %v2036_v25 }
 0x435   : > { %v2038_v30 = vsel %vm1697_vm6, %v2009_v14, %v2037_v15  ;;  %v2515_v14 = vsub.f32 %v4808_v9, %v2426_v41 }
 0x436   : > { %2580 = vperm.xlu0 %2990, %v2511_v19  }
 0x437   : > { %v2454_v38 = vpop.permute.xlu1 %2453 }
 0x438   : > { %v2529_v16 = vsub.f32 %v5032_v28, %v2454_v38  ;;  %v1962_v29 = vpop.permute.xlu0 %1961  ;;  %v5968_v28 = vld [vmem:[#allocation23_spill] sm:$0xff] }
 0x439   : > { %v2010_v57 = vperm.slane %v1962_v29, %v4691_v37  ;;  %v2015_v49 = vperm.slane %v5968_v28, %v4691_v37 }
 0x43a   : > { %2634 = vperm.xlu1 %2991, %v2529_v16  }
 0x43b   : > { %v2039_v35 = vsel %vm1699_vm7, %v2010_v57, %v2038_v30  ;;  %v2432_v56 = vpop.permute.xlu2 %2431 }
 0x43c   : > { %2876 = vst.msk [vmem:[%s4721_s29 + $0x30] sm:$0xff] %vm1726_vm8, %v2039_v35 }
 0x43f   : > { %v2460_v1 = vpop.permute.xlu1 %2459 }
 0x440   : > { %v2532_v46 = vsub.f32 %v5052_v48, %v2460_v1  ;;  %v1971_v36 = vpop.permute.xlu0 %1970 }
 0x441   : > { %v2013_v13 = vperm.slane %v1971_v36, %v4691_v37 }
 0x442   : > { %2643 = vperm.xlu1 %2991, %v2532_v46  }
 0x443   : > { %v2041_v63 = vsel %vm1689_vm2, %v2013_v13, %v5969_v10  ;;  %v2438_v19 = vpop.permute.xlu2 %2437 }
 0x444   : > { %v2042_v51 = vsel %vm1691_vm3, %v2014_v59, %v2041_v63 }
 0x445   : > { %v2043_v5 = vsel %vm1693_vm4, %v2015_v49, %v2042_v51 }
 0x447   : > { %v2466_v24 = vpop.permute.xlu1 %2465 }
 0x448   : > { %v2535_v48 = vsub.f32 %v5070_v45, %v2466_v24  ;;  %v1980_v26 = vpop.permute.xlu0 %1979 }
 0x449   : > { %v2016_v53 = vperm.slane %v1980_v26, %v4691_v37 }
 0x44a   : > { %2652 = vperm.xlu1 %2991, %v2535_v48  }
 0x44b   : > { %v2044_v47 = vsel %vm1695_vm5, %v2016_v53, %v2043_v5  ;;  %v2444_v30 = vpop.permute.xlu2 %2443 }
 0x44c   : > { %v2045_v60 = vsel %vm1697_vm6, %v2017_v62, %v2044_v47  ;;  %v2524_v29 = vsub.f32 %v4847_v7, %v2444_v30 }
 0x44d   : > { %v2046_v17 = vsel %vm1699_vm7, %v2018_v11, %v2045_v60 }
 0x44e   : > { %2877 = vst.msk [vmem:[%s4721_s29 + $0x38] sm:$0xff] %vm1726_vm8, %v2046_v17 }
 0x44f   : > { %v2472_v45 = vpop.permute.xlu1 %2471 }
 0x450   : > { %v2538_v33 = vsub.f32 %v5088_v22, %v2472_v45  ;;  %v2416_v40 = vpop.permute.xlu0 %2415  ;;  %v2518_v22 = vsub.f32 %v4822_v43, %v2432_v56 }
 0x451   : > { %v2510_v55 = vsub.f32 %v4910_v2, %v2416_v40 }
 0x452   : > { %2661 = vperm.xlu1 %2991, %v2538_v33  }
 0x453   : > { %2577 = vperm.xlu2 %2992, %v2510_v55   ;;  %v2450_v9 = vpop.permute.xlu2 %2449 }
 0x454   : > { %v2527_v35 = vsub.f32 %v4856_v3, %v2450_v9 }
 0x458   : > { %v2422_v23 = vpop.permute.xlu0 %2421 }
 0x459   : > { %v2513_v6 = vsub.f32 %v4925_v18, %v2422_v23  ;;  %v2521_v18 = vsub.f32 %v4838_v58, %v2438_v19 }
 0x45b   : > { %2586 = vperm.xlu2 %2992, %v2513_v6   ;;  %v2456_v43 = vpop.permute.xlu2 %2455 }
 0x460   : > { %v2428_v20 = vpop.permute.xlu0 %2427 }
 0x461   : > { %v2516_v25 = vsub.f32 %v4944_v42, %v2428_v20 }
 0x463   : > { %2592 = vperm.xlu2 %2992, %v2515_v14   ;;  %2595 = vperm.xlu0 %2990, %v2516_v25   ;;  %v2462_v36 = vpop.permute.xlu2 %2461 }
 0x468   : > { %v2434_v15 = vpop.permute.xlu0 %2433 }
 0x469   : > { %v2519_v2 = vsub.f32 %v4960_v27, %v2434_v15 }
 0x46b   : > { %2601 = vperm.xlu2 %2992, %v2518_v22   ;;  %2604 = vperm.xlu0 %2990, %v2519_v2   ;;  %v2468_v3 = vpop.permute.xlu2 %2467 }
 0x470   : > { %v2440_v38 = vpop.permute.xlu0 %2439 }
 0x471   : > { %v2522_v16 = vsub.f32 %v4979_v54, %v2440_v38  ;;  %v2530_v54 = vsub.f32 %v4865_v34, %v2456_v43 }
 0x473   : > { %2610 = vperm.xlu2 %2992, %v2521_v18   ;;  %2613 = vperm.xlu0 %2990, %v2522_v16   ;;  %v2474_v34 = vpop.permute.xlu2 %2473 }
 0x474   : > { %v2539_v28 = vsub.f32 %v4892_v21, %v2474_v34 }
 0x478   : > { %v2446_v42 = vpop.permute.xlu0 %2445 }
 0x479   : > { %v2525_v57 = vsub.f32 %v4997_v52, %v2446_v42  ;;  %v2533_v52 = vsub.f32 %v4874_v39, %v2462_v36  ;;  %v2575_v39 = vpop.permute.xlu1 %2574 }
 0x47b   : > { %2619 = vperm.xlu2 %2992, %v2524_v29   ;;  %2622 = vperm.xlu0 %2990, %v2525_v57  }
 0x480   : > { %v2452_v27 = vpop.permute.xlu0 %2451 }
 0x481   : > { %v2528_v1 = vsub.f32 %v5017_v4, %v2452_v27  ;;  %v2536_v4 = vsub.f32 %v4883_v50, %v2468_v3  ;;  %v2584_v10 = vpop.permute.xlu1 %2583 }
 0x482   : > { %v2672_v62 = vperm.slane %v2584_v10, %v4691_v37 }
 0x483   : > { %2628 = vperm.xlu2 %2992, %v2527_v35   ;;  %2631 = vperm.xlu0 %2990, %v2528_v1  }
 0x488   : > { %v2458_v58 = vpop.permute.xlu0 %2457 }
 0x489   : > { %v2531_v46 = vsub.f32 %v5037_v0, %v2458_v58  ;;  %v2590_v51 = vpop.permute.xlu1 %2589 }
 0x48a   : > { %v2674_v17 = vperm.slane %v2590_v51, %v4691_v37 }
 0x48b   : > { %2637 = vperm.xlu2 %2992, %v2530_v54   ;;  %2640 = vperm.xlu0 %2990, %v2531_v46  }
 0x490   : > { %v2464_v7 = vpop.permute.xlu0 %2463 }
 0x491   : > { %v2534_v13 = vsub.f32 %v5057_v44, %v2464_v7  ;;  %v2599_v24 = vpop.permute.xlu1 %2598 }
 0x492   : > { %v2677_v14 = vperm.slane %v2599_v24, %v4691_v37 }
 0x493   : > { %2646 = vperm.xlu2 %2992, %v2533_v52   ;;  %2649 = vperm.xlu0 %2990, %v2534_v13  }
 0x498   : > { %v2470_v8 = vpop.permute.xlu0 %2469 }
 0x499   : > { %v2537_v59 = vsub.f32 %v5077_v61, %v2470_v8  ;;  %v2669_v61 = vperm.slane %v2575_v39, %v4691_v37  ;;  %v2608_v11 = vpop.permute.xlu1 %2607 }
 0x49a   : > { %v2680_v2 = vperm.slane %v2608_v11, %v4691_v37 }
 0x49b   : > { %2655 = vperm.xlu2 %2992, %v2536_v4   ;;  %2658 = vperm.xlu0 %2990, %v2537_v59  }
 0x4a0   : > { %v2476_v0 = vpop.permute.xlu0 %2475 }
 0x4a1   : > { %v2540_v49 = vsub.f32 %v5093_v31, %v2476_v0  ;;  %v2617_v6 = vpop.permute.xlu1 %2616 }
 0x4a2   : > { %v2683_v9 = vperm.slane %v2617_v6, %v4691_v37 }
 0x4a3   : > { %2664 = vperm.xlu2 %2992, %v2539_v28   ;;  %2667 = vperm.xlu0 %2990, %v2540_v49  }
 0x4a8   : > { %v2581_v48 = vpop.permute.xlu0 %2580 }
 0x4a9   : > { %v2671_v21 = vperm.slane %v2581_v48, %v4691_v37  ;;  %v2626_v42 = vpop.permute.xlu1 %2625 }
 0x4aa   : > { %v2686_v36 = vperm.slane %v2626_v42, %v4691_v37 }
 0x4ad   : > { %v2578_v44 = vpop.permute.xlu2 %2577 }
 0x4ae   : > { %v2670_v50 = vperm.slane %v2578_v44, %v4691_v37 }
 0x4b0   : > { %v2701_v26 = vsel %vm1687_vm1, %v2670_v50, %v2669_v61 }
 0x4b1   : > { %v2702_v31 = vsel %vm1689_vm2, %v2671_v21, %v2701_v26  ;;  %v2635_v54 = vpop.permute.xlu1 %2634 }
 0x4b2   : > { %v2703_v32 = vsel %vm1691_vm3, %v2672_v62, %v2702_v31  ;;  %v2689_v34 = vperm.slane %v2635_v54, %v4691_v37 }
 0x4b5   : > { %v2587_v63 = vpop.permute.xlu2 %2586 }
 0x4b6   : > { %v2673_v12 = vperm.slane %v2587_v63, %v4691_v37 }
 0x4b8   : > { %v2704_v47 = vsel %vm1693_vm4, %v2673_v12, %v2703_v32 }
 0x4b9   : > { %v2705_v45 = vsel %vm1695_vm5, %v2674_v17, %v2704_v47  ;;  %v2644_v0 = vpop.permute.xlu1 %2643 }
 0x4ba   : > { %v2692_v63 = vperm.slane %v2644_v0, %v4691_v37 }
 0x4bd   : > { %v2593_v5 = vpop.permute.xlu2 %2592 }
 0x4be   : > { %v2675_v60 = vperm.slane %v2593_v5, %v4691_v37 }
 0x4c0   : > { %v2706_v55 = vsel %vm1697_vm6, %v2675_v60, %v2705_v45 }
 0x4c1   : > { %v2653_v24 = vpop.permute.xlu1 %2652 }
 0x4c2   : > { %v2695_v31 = vperm.slane %v2653_v24, %v4691_v37 }
 0x4c5   : > { %v2602_v53 = vpop.permute.xlu2 %2601 }
 0x4c6   : > { %v2678_v23 = vperm.slane %v2602_v53, %v4691_v37 }
 0x4c8   : > { %v2708_v19 = vsel %vm1687_vm1, %v2678_v23, %v2677_v14 }
 0x4c9   : > { %v2662_v47 = vpop.permute.xlu1 %2661 }
 0x4cd   : > { %v2611_v33 = vpop.permute.xlu2 %2610 }
 0x4ce   : > { %v2681_v38 = vperm.slane %v2611_v33, %v4691_v37 }
 0x4d5   : > { %v2596_v41 = vpop.permute.xlu0 %2595  ;;  %v2620_v15 = vpop.permute.xlu2 %2619 }
 0x4d6   : > { %v2676_v40 = vperm.slane %v2596_v41, %v4691_v37  ;;  %v2684_v57 = vperm.slane %v2620_v15, %v4691_v37  ;;  %v2698_v41 = vperm.slane %v2662_v47, %v4691_v37 }
 0x4d8   : > { %v2707_v56 = vsel %vm1699_vm7, %v2676_v40, %v2706_v55 }
 0x4d9   : > { %2882 = vst.msk [vmem:[%s4721_s29 + $0x60] sm:$0xff] %vm1726_vm8, %v2707_v56 }
 0x4dd   : > { %v2605_v20 = vpop.permute.xlu0 %2604  ;;  %v2629_v35 = vpop.permute.xlu2 %2628 }
 0x4de   : > { %v2679_v25 = vperm.slane %v2605_v20, %v4691_v37  ;;  %v2687_v3 = vperm.slane %v2629_v35, %v4691_v37 }
 0x4e0   : > { %v2709_v22 = vsel %vm1689_vm2, %v2679_v25, %v2708_v19 }
 0x4e1   : > { %v2710_v30 = vsel %vm1691_vm3, %v2680_v2, %v2709_v22 }
 0x4e2   : > { %v2711_v29 = vsel %vm1693_vm4, %v2681_v38, %v2710_v30 }
 0x4e5   : > { %v2614_v18 = vpop.permute.xlu0 %2613  ;;  %v2638_v7 = vpop.permute.xlu2 %2637 }
 0x4e6   : > { %v2682_v16 = vperm.slane %v2614_v18, %v4691_v37  ;;  %v2690_v49 = vperm.slane %v2638_v7, %v4691_v37 }
 0x4e8   : > { %v2712_v43 = vsel %vm1695_vm5, %v2682_v16, %v2711_v29 }
 0x4e9   : > { %v2713_v27 = vsel %vm1697_vm6, %v2683_v9, %v2712_v43 }
 0x4ea   : > { %v2714_v1 = vsel %vm1699_vm7, %v2684_v57, %v2713_v27 }
 0x4eb   : > { %2883 = vst.msk [vmem:[%s4721_s29 + $0x68] sm:$0xff] %vm1726_vm8, %v2714_v1 }
 0x4ed   : > { %v2623_v58 = vpop.permute.xlu0 %2622  ;;  %v2647_v44 = vpop.permute.xlu2 %2646 }
 0x4ee   : > { %v2685_v46 = vperm.slane %v2623_v58, %v4691_v37  ;;  %v2693_v26 = vperm.slane %v2647_v44, %v4691_v37 }
 0x4f0   : > { %v2715_v52 = vsel %vm1687_vm1, %v2686_v36, %v2685_v46 }
 0x4f1   : > { %v2716_v4 = vsel %vm1689_vm2, %v2687_v3, %v2715_v52 }
 0x4f5   : > { %v2632_v13 = vpop.permute.xlu0 %2631  ;;  %v2656_v53 = vpop.permute.xlu2 %2655 }
 0x4f6   : > { %v2688_v8 = vperm.slane %v2632_v13, %v4691_v37  ;;  %v2696_v32 = vperm.slane %v2656_v53, %v4691_v37 }
 0x4f8   : > { %v2717_v59 = vsel %vm1691_vm3, %v2688_v8, %v2716_v4 }
 0x4f9   : > { %v2718_v28 = vsel %vm1693_vm4, %v2689_v34, %v2717_v59 }
 0x4fa   : > { %v2719_v51 = vsel %vm1695_vm5, %v2690_v49, %v2718_v28 }
 0x4fd   : > { %v2641_v39 = vpop.permute.xlu0 %2640  ;;  %v2665_v45 = vpop.permute.xlu2 %2664 }
 0x4fe   : > { %v2691_v10 = vperm.slane %v2641_v39, %v4691_v37  ;;  %v2699_v40 = vperm.slane %v2665_v45, %v4691_v37 }
 0x500   : > { %v2720_v5 = vsel %vm1697_vm6, %v2691_v10, %v2719_v51 }
 0x501   : > { %v2721_v50 = vsel %vm1699_vm7, %v2692_v63, %v2720_v5 }
 0x502   : > { %2884 = vst.msk [vmem:[%s4721_s29 + $0x70] sm:$0xff] %vm1726_vm8, %v2721_v50 }
 0x505   : > { %v2650_v61 = vpop.permute.xlu0 %2649 }
 0x506   : > { %v2694_v48 = vperm.slane %v2650_v61, %v4691_v37 }
 0x508   : > { %v2722_v21 = vsel %vm1687_vm1, %v2694_v48, %v2693_v26 }
 0x509   : > { %v2723_v12 = vsel %vm1689_vm2, %v2695_v31, %v2722_v21 }
 0x50a   : > { %v2724_v60 = vsel %vm1691_vm3, %v2696_v32, %v2723_v12 }
 0x50d   : > { %v2659_v62 = vpop.permute.xlu0 %2658 }
 0x50e   : > { %v2697_v11 = vperm.slane %v2659_v62, %v4691_v37 }
 0x510   : > { %v2725_v17 = vsel %vm1693_vm4, %v2697_v11, %v2724_v60 }
 0x511   : > { %v2726_v33 = vsel %vm1695_vm5, %v2698_v41, %v2725_v17 }
 0x512   : > { %v2727_v23 = vsel %vm1697_vm6, %v2699_v40, %v2726_v33 }
 0x515   : > { %v2668_v55 = vpop.permute.xlu0 %2667 }
 0x516   : > { %v2700_v56 = vperm.slane %v2668_v55, %v4691_v37 }
 0x518   : > { %v2728_v6 = vsel %vm1699_vm7, %v2700_v56, %v2727_v23 }
 0x519   : > { %2885 = vst.msk [vmem:[%s4721_s29 + $0x78] sm:$0xff] %vm1726_vm8, %v2728_v6 }
 0x51a   : > { %s2892_s2 = sshll.u32 %s3069_s9, 5  ;;  %s2762_s3 = sshll.u32 %s4721_s29, 4  ;;  %s2763_s3 = int_to_ptr.vmem [resolvable:$true] %s2762_s3 }
 0x51b   : > { %s2751_s13 = scalar_lea.hbm %s5549_s1, %s2892_s2  ;;  %s3094_s16 = smov 512  }
 0x51c   : > { %s2764_s15 = sshll.u32 %s2751_s13, 4  ;;  %2895 = sst [smem:[#allocation7]] (%p3162_p9), %s3094_s16  ;;  %s2765_s15 = int_to_ptr.hbm [resolvable:$true] %s2764_s15 }
 0x51d   : > { %s3095_s5 = smov 1024   ;;  %s3096_s17 = smov 4  }
 0x51e   : > { %2896 = sst [smem:[#allocation7 + $0x1]] (%p3162_p9), %s3095_s5  ;;  %s3097_s9 = smov 128  }
 0x51f   : > { %2897 = sst [smem:[#allocation7 + $0x2]] (%p3162_p9), %s3096_s17  ;;  %s3098_s18 = smov 8  }
 0x520   : > { %2898 = sst [smem:[#allocation7 + $0x3]] (%p3162_p9), %s3097_s9  ;;  %s3099_s22 = smov [#allocation6]  }
 0x521   : > { %2899 = sst [smem:[#allocation7 + $0x4]] (%p3162_p9), %s3097_s9  ;;  %s3100_s23 = smov 0  }
 0x522   : > { %2900 = sst [smem:[#allocation7 + $0x5]] (%p3162_p9), %s3098_s18 }
 0x523   : > { %2901 = dma.general (%p3162_p9), %s2763_s3, 2048, %s2765_s15, %s2739_s30, %s3099_s22, [#allocation7], %s3100_s23, 0  }
 0x524 PF: > { %s2792_s24 = sand.u32 1, %s3057_s6   ;;  %p2908_p4 = pnand %p2867_p12, %p3169_p11 }
 0x525   : > { %s2793_s25 = scalar_lea.sflag [#allocation4], %s2792_s24 }
 0x526   : > { %p2909_p5 = pneg %p2908_p4 }
 0x528   : > { %3052 = dma.done.wait (%p2909_p5), %s2793_s25, 2048  }
 0x529   : > { %3054 = vsyncadd (%p2909_p5), %s2793_s25, 4294965248  ;;  %s17_s11 = sadd.s32 1, %s3077_s11   ;;  %s5972_s6 = smov %s3061_s7 }
 0x52a   : > { %p14_p6 = scmp.ge.s32.totalorder %s17_s11, 4   ;;  %s5973_s7 = smov %s3065_s8 }
 0x52b   : > { %s5974_s8 = smov %s3167_s20  ;;  %s5975_s9 = smov %s3073_s10 }
 0x52c   : > { %s5976_s10 = smov %s5978_s14  ;;  %16 = sbr.rel (!%p14_p6) target bundleno = 6 (0x6), region = 77 }
 0x531   :  { %2799 = vsyncpa [#allocation3], 1 }
 0x532   :  { %2801 = vsyncpa [#allocation3 + $0x1], 1 }
 0x533   :  { %2802 = vsyncpa [#allocation4], 1 }
 0x534   :  { %2804 = vsyncpa [#allocation4 + $0x1], 1 }

</bundles_post_ra>
